<compile_context>
chip_gen: v7x
topology: tpu7x:2x2x1
jax: 0.10.0
libtpu: 0.0.40
codegen_flags: <defaults>
</compile_context>

<pallas_src>
import functools

import jax
import jax.numpy as jnp
from jax.experimental import pallas as pl
from jax.experimental.pallas import tpu as pltpu


def cnn_lstm_kernel(xp_ref, convw_ref, wbd_ref, wfuse_ref, bias_ref, out_ref):
  """Fused Conv1d -> ReLU -> MaxPool1d(2) -> LSTM -> fc1 -> ReLU -> fc2."""
  bb = xp_ref.shape[0]                         # batch block
  lane_w = wfuse_ref.shape[1]                  # 128 (= 4*hidden = padded fc width)
  hidden = lane_w // 4                         # 32
  four_h = 4 * hidden                          # 128
  seq_len = wbd_ref.shape[1] // four_h         # T = L // 2
  half = convw_ref.shape[1] // 2               # T * 16

  cd = wbd_ref.dtype                           # matmul operand dtype (bf16)

  # Loop-invariant weight/bias loads (hoisted, single VMEM read each).
  wh = wfuse_ref[0:hidden, :]                            # (H, 4H) recurrent
  fc1_w = wfuse_ref[hidden:2 * hidden, :]                # (H, 128), lanes>=64 zero
  fc2_w = wfuse_ref[2 * hidden:2 * hidden + lane_w, :]   # (128, 128), rows>=64 zero
  gate_b = bias_ref[0:1, :]                              # (1, 4H) = b_ih + b_hh
  fc1_b = bias_ref[1:2, :]                               # (1, 128) zero-padded
  fc2_b = bias_ref[2:3, :]                               # (1, 128) zero-padded

  # Conv1d(1->16, k=3, pad=1) + bias + ReLU + MaxPool(2) as one lane-dense
  # matmul: even conv positions land in lanes [0, T*16), odd in [T*16, 2*T*16).
  # Kept in f32 on the raw-input path.
  conv = jnp.maximum(
      jnp.dot(xp_ref[...], convw_ref[...], preferred_element_type=jnp.float32),
      0.0)                                               # (bb, 2*T*16)
  pooled = jnp.maximum(conv[:, 0:half], conv[:, half:2 * half])   # (bb, T*16)

  # Whole-sequence input projection through block-diagonal fused gate weights:
  # one K = T*16 matmul; step t's gate pre-activations sit at lanes
  # [t*4H, (t+1)*4H) -> tile-aligned slicing in the serial loop.
  proj = jnp.dot(pooled.astype(cd), wbd_ref[...],
                 preferred_element_type=jnp.float32)     # (bb, T*4H) f32

  h = jnp.zeros((bb, hidden), jnp.float32)
  c = jnp.zeros((bb, hidden), jnp.float32)
  # NOTE: seq_len == 8 here; for much longer sequences switch to lax.fori_loop
  # (small unroll) with proj held in VMEM scratch to bound vreg live ranges.
  for t in range(seq_len):
    # h is re-cast to bf16 per step; fine at T=8 (documented accuracy note).
    gates = (proj[:, t * four_h:(t + 1) * four_h] + gate_b
             + jnp.dot(h.astype(cd), wh, preferred_element_type=jnp.float32))
    # Full-width nonlinearities (one sigmoid + one tanh per step), then slice.
    sig = jax.nn.sigmoid(gates)                          # (bb, 4H)
    th = jnp.tanh(gates)                                 # (bb, 4H)
    i_g = sig[:, 0:hidden]
    f_g = sig[:, hidden:2 * hidden]
    o_g = sig[:, 3 * hidden:4 * hidden]
    g_g = th[:, 2 * hidden:3 * hidden]
    c = f_g * c + i_g * g_g
    h = o_g * jnp.tanh(c)

  # fc1 -> ReLU -> dropout(eval: identity) -> fc2, all 128-lane dense.
  # TODO(synk): train-mode dropout (p=0.3) not implemented; eval semantics used.
  y = jnp.maximum(
      jnp.dot(h.astype(cd), fc1_w, preferred_element_type=jnp.float32) + fc1_b,
      0.0)                                               # (bb, 128)
  out_ref[...] = jnp.dot(y.astype(cd), fc2_w,
                         preferred_element_type=jnp.float32) + fc2_b


def init_params(num_classes=4):
  # Deterministic, PyTorch-default-style uniform(-1/sqrt(fan_in), 1/sqrt(fan_in)).
  ks = jax.random.split(jax.random.PRNGKey(42), 10)

  def u(key, shape, fan_in):
    bound = 1.0 / float(fan_in) ** 0.5
    return jax.random.uniform(key, shape, jnp.float32, -bound, bound)

  H = 32
  return dict(
      conv_w=u(ks[0], (16, 1, 3), 3),
      conv_b=u(ks[1], (16,), 3),
      w_ih=u(ks[2], (4 * H, 16), H),
      w_hh=u(ks[3], (4 * H, H), H),
      b_ih=u(ks[4], (4 * H,), H),
      b_hh=u(ks[5], (4 * H,), H),
      fc1_w=u(ks[6], (64, H), H),
      fc1_b=u(ks[7], (64,), H),
      fc2_w=u(ks[8], (num_classes, 64), 64),
      fc2_b=u(ks[9], (num_classes,), 64),
  )


def _round_up(v, m):
  return -(-v // m) * m


@functools.partial(jax.jit, static_argnames=("num_classes", "hidden", "compute_dtype"))
def cnn_lstm_forward(x, params, num_classes=4, hidden=32,
                     compute_dtype=jnp.bfloat16):
  """x: (B, 1, L) float32 (PyTorch NCL). Returns (B, num_classes) f32 logits."""
  B, c_in, L = x.shape
  assert c_in == 1 and L % 2 == 0
  H = hidden
  T = L // 2
  LANE = 128
  assert 4 * H == LANE, "kernel packs the fused i|f|g|o gates into 128 lanes"
  fc1_dim = params["fc1_w"].shape[0]                      # 64
  assert fc1_dim <= LANE and num_classes <= LANE

  # --- banded conv matrix: xp_aug (B, L+3) @ conv_w (L+3, 2*T*16) ------------
  cw = params["conv_w"][:, 0, :].astype(jnp.float32)      # (16, 3) [ch, tap]
  cb = params["conv_b"].astype(jnp.float32)               # (16,)
  Lp = L + 2
  rows = jnp.arange(Lp)
  tt = jnp.arange(T)
  halves = []
  for parity in (0, 1):                                   # even / odd conv positions
    m = jnp.zeros((Lp, T, 16), jnp.float32)
    for k in range(3):
      onehot = (rows[:, None] == (2 * tt + parity + k)[None, :]).astype(jnp.float32)
      m = m + onehot[:, :, None] * cw[:, k][None, None, :]
    halves.append(m.reshape(Lp, T * 16))
  conv_w = jnp.concatenate(halves, axis=1)                # (Lp, 2*T*16)
  conv_w = jnp.concatenate(                               # + bias row (ones column)
      [conv_w, jnp.tile(cb, 2 * T).reshape(1, -1)], axis=0)   # (Lp+1, 2*T*16) f32

  # --- block-diagonal fused-gate input projection: kron(I_T, W_ih^T) ---------
  wbd = jnp.kron(jnp.eye(T, dtype=jnp.float32),
                 params["w_ih"].T.astype(jnp.float32)).astype(compute_dtype)
  # (T*16, T*4H)

  # --- fused small weights: [W_hh^T ; fc1^T(pad 128) ; fc2^T(pad 128x128)] ---
  wh = params["w_hh"].T                                            # (H, 4H)
  fc1w = jnp.pad(params["fc1_w"].T, ((0, 0), (0, LANE - fc1_dim)))  # (H, 128)
  fc2w = jnp.pad(params["fc2_w"].T,
                 ((0, LANE - fc1_dim), (0, LANE - num_classes)))    # (128, 128)
  wfuse = jnp.concatenate([wh, fc1w, fc2w], axis=0).astype(compute_dtype)  # (2H+128, 128)

  gate_b = (params["b_ih"] + params["b_hh"]).reshape(1, 4 * H)
  fc1_b = jnp.pad(params["fc1_b"].reshape(1, -1), ((0, 0), (0, LANE - fc1_dim)))
  fc2_b = jnp.pad(params["fc2_b"].reshape(1, -1), ((0, 0), (0, LANE - num_classes)))
  bias_pack = jnp.concatenate([gate_b, fc1_b, fc2_b], axis=0).astype(jnp.float32)

  # --- batch blocking: >=2 blocks when B >= 16 (v7x megacore), cap 256 -------
  if B <= 8:
    block_b = B
  else:
    block_b = min(256, _round_up(_round_up(B, 2) // 2, 8))
  b_pad = _round_up(B, block_b)
  grid = (b_pad // block_b,)

  # xp_aug: zero-padded signal + a trailing ones column (feeds the bias row).
  xs = x[:, 0, :].astype(jnp.float32)
  xp = jnp.pad(xs, ((0, b_pad - B), (1, 1)))                       # (b_pad, L+2)
  xp = jnp.concatenate([xp, jnp.ones((b_pad, 1), jnp.float32)], axis=1)  # (b_pad, L+3)

  in_specs = [
      pl.BlockSpec((block_b, Lp + 1), lambda i: (i, 0)),
      pl.BlockSpec(conv_w.shape, lambda i: (0, 0)),
      pl.BlockSpec(wbd.shape, lambda i: (0, 0)),
      pl.BlockSpec(wfuse.shape, lambda i: (0, 0)),
      pl.BlockSpec(bias_pack.shape, lambda i: (0, 0)),
  ]
  out_specs = pl.BlockSpec((block_b, LANE), lambda i: (i, 0))

  out = pl.pallas_call(
      cnn_lstm_kernel,
      out_shape=jax.ShapeDtypeStruct((b_pad, LANE), jnp.float32),
      grid=grid,
      in_specs=in_specs,
      out_specs=out_specs,
      compiler_params=pltpu.CompilerParams(
          dimension_semantics=("parallel",),
          vmem_limit_bytes=32 * 1024 * 1024),
  )(xp, conv_w, wbd, wfuse, bias_pack)

  # Lane-dense kernel output; slice to the real class count here.
  return out[:B, :num_classes]


def reference_forward(x, params, hidden=32):
  """Pure-JAX f32 reference mirroring the PyTorch forward (eval mode)."""
  B, _, L = x.shape
  H = hidden
  cw = params["conv_w"][:, 0, :]                          # (16, 3)
  xpad = jnp.pad(x[:, 0, :], ((0, 0), (1, 1)))            # (B, L+2)
  conv = (xpad[:, :-2, None] * cw[:, 0][None, None, :]
          + xpad[:, 1:-1, None] * cw[:, 1][None, None, :]
          + xpad[:, 2:, None] * cw[:, 2][None, None, :]
          + params["conv_b"][None, None, :])              # (B, L, 16)
  act = jnp.maximum(conv, 0.0)
  pooled = jnp.maximum(act[:, 0::2, :], act[:, 1::2, :])  # (B, T, 16)

  Wi, Wh = params["w_ih"], params["w_hh"]
  b = params["b_ih"] + params["b_hh"]
  h = jnp.zeros((B, H), jnp.float32)
  c = jnp.zeros((B, H), jnp.float32)
  for t in range(pooled.shape[1]):
    gates = pooled[:, t, :] @ Wi.T + h @ Wh.T + b
    i = jax.nn.sigmoid(gates[:, 0:H])
    f = jax.nn.sigmoid(gates[:, H:2 * H])
    g = jnp.tanh(gates[:, 2 * H:3 * H])
    o = jax.nn.sigmoid(gates[:, 3 * H:4 * H])
    c = f * c + i * g
    h = o * jnp.tanh(c)

  y = jnp.maximum(h @ params["fc1_w"].T + params["fc1_b"], 0.0)
  return y @ params["fc2_w"].T + params["fc2_b"]


if __name__ == "__main__":
  num_classes = 4
  B, L = 2, 16                                   # T = L//2 = 8, hidden = 32
  x = jax.random.normal(jax.random.PRNGKey(0), (B, 1, L), jnp.float32)
  params = init_params(num_classes)

  out = jax.block_until_ready(cnn_lstm_forward(x, params, num_classes=num_classes))
  ref = jax.block_until_ready(reference_forward(x, params))
  assert out.shape == (B, num_classes), out.shape
  # bf16 matmul operands (f32 accumulate) vs. full-f32 reference.
  assert jnp.allclose(out, ref, atol=3e-2, rtol=3e-2), (out, ref)

  # Also exercise the multi-block (padded, grid=2) batch path.
  B2 = 16
  x2 = jax.random.normal(jax.random.PRNGKey(1), (B2, 1, L), jnp.float32)
  out2 = jax.block_until_ready(cnn_lstm_forward(x2, params, num_classes=num_classes))
  ref2 = jax.block_until_ready(reference_forward(x2, params))
  assert out2.shape == (B2, num_classes), out2.shape
  assert jnp.allclose(out2, ref2, atol=3e-2, rtol=3e-2), (out2, ref2)

  print("KERNEL_OK")
</pallas_src>

<mosaic_0001>
module attributes {stable_mosaic.version = 11 : i64} {
  func.func @cnn_lstm_kernel(%arg0: i32, %arg1: memref<2x19xf32, #tpu.memory_space<vmem>>, %arg2: memref<19x256xf32, #tpu.memory_space<vmem>>, %arg3: memref<128x1024xbf16, #tpu.memory_space<vmem>>, %arg4: memref<192x128xbf16, #tpu.memory_space<vmem>>, %arg5: memref<3x128xf32, #tpu.memory_space<vmem>>, %arg6: memref<2x128xf32, #tpu.memory_space<vmem>>) attributes {dimension_semantics = [#tpu.dimension_semantics<parallel>], iteration_bounds = array<i64: 1>, scalar_prefetch = 0 : i64, scratch_operands = 0 : i64, tpu.core_type = #tpu.core_type<tc>, window_params = [{transform_indices = @transform_0, window_bounds = array<i64: 2, 19>}, {pipeline_mode = #tpu.pipeline_mode<synchronous>, transform_indices = @transform_1, window_bounds = array<i64: 19, 256>}, {pipeline_mode = #tpu.pipeline_mode<synchronous>, transform_indices = @transform_2, window_bounds = array<i64: 128, 1024>}, {pipeline_mode = #tpu.pipeline_mode<synchronous>, transform_indices = @transform_3, window_bounds = array<i64: 192, 128>}, {pipeline_mode = #tpu.pipeline_mode<synchronous>, transform_indices = @transform_4, window_bounds = array<i64: 3, 128>}, {transform_indices = @transform_5, window_bounds = array<i64: 2, 128>}]} {
    %c0 = arith.constant 0 : index
    %c0_0 = arith.constant 0 : index
    %0 = vector.load %arg4[%c0, %c0_0] : memref<192x128xbf16, #tpu.memory_space<vmem>>, vector<32x128xbf16>
    %c32 = arith.constant 32 : index
    %c0_1 = arith.constant 0 : index
    %1 = vector.load %arg4[%c32, %c0_1] : memref<192x128xbf16, #tpu.memory_space<vmem>>, vector<32x128xbf16>
    %c64 = arith.constant 64 : index
    %c0_2 = arith.constant 0 : index
    %2 = vector.load %arg4[%c64, %c0_2] : memref<192x128xbf16, #tpu.memory_space<vmem>>, vector<128x128xbf16>
    %c0_3 = arith.constant 0 : index
    %c0_4 = arith.constant 0 : index
    %3 = vector.load %arg5[%c0_3, %c0_4] : memref<3x128xf32, #tpu.memory_space<vmem>>, vector<1x128xf32>
    %c1 = arith.constant 1 : index
    %c0_5 = arith.constant 0 : index
    %4 = vector.load %arg5[%c1, %c0_5] : memref<3x128xf32, #tpu.memory_space<vmem>>, vector<1x128xf32>
    %c2 = arith.constant 2 : index
    %c0_6 = arith.constant 0 : index
    %5 = vector.load %arg5[%c2, %c0_6] : memref<3x128xf32, #tpu.memory_space<vmem>>, vector<1x128xf32>
    %c0_7 = arith.constant 0 : index
    %c0_8 = arith.constant 0 : index
    %6 = vector.load %arg1[%c0_7, %c0_8] : memref<2x19xf32, #tpu.memory_space<vmem>>, vector<2x19xf32>
    %c0_9 = arith.constant 0 : index
    %c0_10 = arith.constant 0 : index
    %7 = vector.load %arg2[%c0_9, %c0_10] : memref<19x256xf32, #tpu.memory_space<vmem>>, vector<19x256xf32>
    %cst = arith.constant dense<0.000000e+00> : vector<2x256xf32>
    %8 = tpu.matmul %6, %7, %cst {dimension_numbers = #tpu.dot_dimension_numbers<[1], [0], [0], [1], [0, 0, 1, 1], [], []>} : vector<2x19xf32>, vector<19x256xf32>, vector<2x256xf32> -> vector<2x256xf32>
    %cst_11 = arith.constant 0.000000e+00 : f32
    %9 = vector.broadcast %cst_11 : f32 to vector<2x256xf32>
    %10 = arith.maximumf %8, %9 : vector<2x256xf32>
    %11 = vector.extract_strided_slice %10 {offsets = [0, 0], sizes = [2, 128], strides = [1, 1]} : vector<2x256xf32> to vector<2x128xf32>
    %12 = vector.extract_strided_slice %10 {offsets = [0, 128], sizes = [2, 128], strides = [1, 1]} : vector<2x256xf32> to vector<2x128xf32>
    %13 = arith.maximumf %11, %12 : vector<2x128xf32>
    %14 = arith.truncf %13 : vector<2x128xf32> to vector<2x128xbf16>
    %c0_12 = arith.constant 0 : index
    %c0_13 = arith.constant 0 : index
    %15 = vector.load %arg3[%c0_12, %c0_13] : memref<128x1024xbf16, #tpu.memory_space<vmem>>, vector<128x1024xbf16>
    %cst_14 = arith.constant dense<0.000000e+00> : vector<2x1024xf32>
    %16 = tpu.matmul %14, %15, %cst_14 {dimension_numbers = #tpu.dot_dimension_numbers<[1], [0], [0], [1], [0, 0, 1, 1], [], []>} : vector<2x128xbf16>, vector<128x1024xbf16>, vector<2x1024xf32> -> vector<2x1024xf32>
    %cst_15 = arith.constant 0.000000e+00 : f32
    %17 = vector.broadcast %cst_15 : f32 to vector<2x32xf32>
    %cst_16 = arith.constant 0.000000e+00 : f32
    %18 = vector.broadcast %cst_16 : f32 to vector<2x32xf32>
    %19 = vector.extract_strided_slice %16 {offsets = [0, 0], sizes = [2, 128], strides = [1, 1]} : vector<2x1024xf32> to vector<2x128xf32>
    %20 = vector.broadcast %3 : vector<1x128xf32> to vector<2x128xf32>
    %21 = arith.addf %19, %20 : vector<2x128xf32>
    %22 = arith.truncf %17 : vector<2x32xf32> to vector<2x32xbf16>
    %cst_17 = arith.constant dense<0.000000e+00> : vector<2x128xf32>
    %23 = tpu.matmul %22, %0, %cst_17 {dimension_numbers = #tpu.dot_dimension_numbers<[1], [0], [0], [1], [0, 0, 1, 1], [], []>} : vector<2x32xbf16>, vector<32x128xbf16>, vector<2x128xf32> -> vector<2x128xf32>
    %24 = arith.addf %21, %23 : vector<2x128xf32>
    %25 = arith.negf %24 : vector<2x128xf32>
    %26 = math.exp %25 : vector<2x128xf32>
    %cst_18 = arith.constant 1.000000e+00 : f32
    %27 = vector.broadcast %cst_18 : f32 to vector<2x128xf32>
    %28 = arith.addf %27, %26 : vector<2x128xf32>
    %29 = arith.divf %27, %28 : vector<2x128xf32>
    %30 = math.tanh %24 : vector<2x128xf32>
    %31 = vector.extract_strided_slice %29 {offsets = [0, 0], sizes = [2, 32], strides = [1, 1]} : vector<2x128xf32> to vector<2x32xf32>
    %32 = vector.extract_strided_slice %29 {offsets = [0, 32], sizes = [2, 32], strides = [1, 1]} : vector<2x128xf32> to vector<2x32xf32>
    %33 = vector.extract_strided_slice %29 {offsets = [0, 96], sizes = [2, 32], strides = [1, 1]} : vector<2x128xf32> to vector<2x32xf32>
    %34 = vector.extract_strided_slice %30 {offsets = [0, 64], sizes = [2, 32], strides = [1, 1]} : vector<2x128xf32> to vector<2x32xf32>
    %35 = arith.mulf %32, %18 : vector<2x32xf32>
    %36 = arith.mulf %31, %34 : vector<2x32xf32>
    %37 = arith.addf %35, %36 : vector<2x32xf32>
    %38 = math.tanh %37 : vector<2x32xf32>
    %39 = arith.mulf %33, %38 : vector<2x32xf32>
    %40 = vector.extract_strided_slice %16 {offsets = [0, 128], sizes = [2, 128], strides = [1, 1]} : vector<2x1024xf32> to vector<2x128xf32>
    %41 = vector.broadcast %3 : vector<1x128xf32> to vector<2x128xf32>
    %42 = arith.addf %40, %41 : vector<2x128xf32>
    %43 = arith.truncf %39 : vector<2x32xf32> to vector<2x32xbf16>
    %cst_19 = arith.constant dense<0.000000e+00> : vector<2x128xf32>
    %44 = tpu.matmul %43, %0, %cst_19 {dimension_numbers = #tpu.dot_dimension_numbers<[1], [0], [0], [1], [0, 0, 1, 1], [], []>} : vector<2x32xbf16>, vector<32x128xbf16>, vector<2x128xf32> -> vector<2x128xf32>
    %45 = arith.addf %42, %44 : vector<2x128xf32>
    %46 = arith.negf %45 : vector<2x128xf32>
    %47 = math.exp %46 : vector<2x128xf32>
    %cst_20 = arith.constant 1.000000e+00 : f32
    %48 = vector.broadcast %cst_20 : f32 to vector<2x128xf32>
    %49 = arith.addf %48, %47 : vector<2x128xf32>
    %50 = arith.divf %48, %49 : vector<2x128xf32>
    %51 = math.tanh %45 : vector<2x128xf32>
    %52 = vector.extract_strided_slice %50 {offsets = [0, 0], sizes = [2, 32], strides = [1, 1]} : vector<2x128xf32> to vector<2x32xf32>
    %53 = vector.extract_strided_slice %50 {offsets = [0, 32], sizes = [2, 32], strides = [1, 1]} : vector<2x128xf32> to vector<2x32xf32>
    %54 = vector.extract_strided_slice %50 {offsets = [0, 96], sizes = [2, 32], strides = [1, 1]} : vector<2x128xf32> to vector<2x32xf32>
    %55 = vector.extract_strided_slice %51 {offsets = [0, 64], sizes = [2, 32], strides = [1, 1]} : vector<2x128xf32> to vector<2x32xf32>
    %56 = arith.mulf %53, %37 : vector<2x32xf32>
    %57 = arith.mulf %52, %55 : vector<2x32xf32>
    %58 = arith.addf %56, %57 : vector<2x32xf32>
    %59 = math.tanh %58 : vector<2x32xf32>
    %60 = arith.mulf %54, %59 : vector<2x32xf32>
    %61 = vector.extract_strided_slice %16 {offsets = [0, 256], sizes = [2, 128], strides = [1, 1]} : vector<2x1024xf32> to vector<2x128xf32>
    %62 = vector.broadcast %3 : vector<1x128xf32> to vector<2x128xf32>
    %63 = arith.addf %61, %62 : vector<2x128xf32>
    %64 = arith.truncf %60 : vector<2x32xf32> to vector<2x32xbf16>
    %cst_21 = arith.constant dense<0.000000e+00> : vector<2x128xf32>
    %65 = tpu.matmul %64, %0, %cst_21 {dimension_numbers = #tpu.dot_dimension_numbers<[1], [0], [0], [1], [0, 0, 1, 1], [], []>} : vector<2x32xbf16>, vector<32x128xbf16>, vector<2x128xf32> -> vector<2x128xf32>
    %66 = arith.addf %63, %65 : vector<2x128xf32>
    %67 = arith.negf %66 : vector<2x128xf32>
    %68 = math.exp %67 : vector<2x128xf32>
    %cst_22 = arith.constant 1.000000e+00 : f32
    %69 = vector.broadcast %cst_22 : f32 to vector<2x128xf32>
    %70 = arith.addf %69, %68 : vector<2x128xf32>
    %71 = arith.divf %69, %70 : vector<2x128xf32>
    %72 = math.tanh %66 : vector<2x128xf32>
    %73 = vector.extract_strided_slice %71 {offsets = [0, 0], sizes = [2, 32], strides = [1, 1]} : vector<2x128xf32> to vector<2x32xf32>
    %74 = vector.extract_strided_slice %71 {offsets = [0, 32], sizes = [2, 32], strides = [1, 1]} : vector<2x128xf32> to vector<2x32xf32>
    %75 = vector.extract_strided_slice %71 {offsets = [0, 96], sizes = [2, 32], strides = [1, 1]} : vector<2x128xf32> to vector<2x32xf32>
    %76 = vector.extract_strided_slice %72 {offsets = [0, 64], sizes = [2, 32], strides = [1, 1]} : vector<2x128xf32> to vector<2x32xf32>
    %77 = arith.mulf %74, %58 : vector<2x32xf32>
    %78 = arith.mulf %73, %76 : vector<2x32xf32>
    %79 = arith.addf %77, %78 : vector<2x32xf32>
    %80 = math.tanh %79 : vector<2x32xf32>
    %81 = arith.mulf %75, %80 : vector<2x32xf32>
    %82 = vector.extract_strided_slice %16 {offsets = [0, 384], sizes = [2, 128], strides = [1, 1]} : vector<2x1024xf32> to vector<2x128xf32>
    %83 = vector.broadcast %3 : vector<1x128xf32> to vector<2x128xf32>
    %84 = arith.addf %82, %83 : vector<2x128xf32>
    %85 = arith.truncf %81 : vector<2x32xf32> to vector<2x32xbf16>
    %cst_23 = arith.constant dense<0.000000e+00> : vector<2x128xf32>
    %86 = tpu.matmul %85, %0, %cst_23 {dimension_numbers = #tpu.dot_dimension_numbers<[1], [0], [0], [1], [0, 0, 1, 1], [], []>} : vector<2x32xbf16>, vector<32x128xbf16>, vector<2x128xf32> -> vector<2x128xf32>
    %87 = arith.addf %84, %86 : vector<2x128xf32>
    %88 = arith.negf %87 : vector<2x128xf32>
    %89 = math.exp %88 : vector<2x128xf32>
    %cst_24 = arith.constant 1.000000e+00 : f32
    %90 = vector.broadcast %cst_24 : f32 to vector<2x128xf32>
    %91 = arith.addf %90, %89 : vector<2x128xf32>
    %92 = arith.divf %90, %91 : vector<2x128xf32>
    %93 = math.tanh %87 : vector<2x128xf32>
    %94 = vector.extract_strided_slice %92 {offsets = [0, 0], sizes = [2, 32], strides = [1, 1]} : vector<2x128xf32> to vector<2x32xf32>
    %95 = vector.extract_strided_slice %92 {offsets = [0, 32], sizes = [2, 32], strides = [1, 1]} : vector<2x128xf32> to vector<2x32xf32>
    %96 = vector.extract_strided_slice %92 {offsets = [0, 96], sizes = [2, 32], strides = [1, 1]} : vector<2x128xf32> to vector<2x32xf32>
    %97 = vector.extract_strided_slice %93 {offsets = [0, 64], sizes = [2, 32], strides = [1, 1]} : vector<2x128xf32> to vector<2x32xf32>
    %98 = arith.mulf %95, %79 : vector<2x32xf32>
    %99 = arith.mulf %94, %97 : vector<2x32xf32>
    %100 = arith.addf %98, %99 : vector<2x32xf32>
    %101 = math.tanh %100 : vector<2x32xf32>
    %102 = arith.mulf %96, %101 : vector<2x32xf32>
    %103 = vector.extract_strided_slice %16 {offsets = [0, 512], sizes = [2, 128], strides = [1, 1]} : vector<2x1024xf32> to vector<2x128xf32>
    %104 = vector.broadcast %3 : vector<1x128xf32> to vector<2x128xf32>
    %105 = arith.addf %103, %104 : vector<2x128xf32>
    %106 = arith.truncf %102 : vector<2x32xf32> to vector<2x32xbf16>
    %cst_25 = arith.constant dense<0.000000e+00> : vector<2x128xf32>
    %107 = tpu.matmul %106, %0, %cst_25 {dimension_numbers = #tpu.dot_dimension_numbers<[1], [0], [0], [1], [0, 0, 1, 1], [], []>} : vector<2x32xbf16>, vector<32x128xbf16>, vector<2x128xf32> -> vector<2x128xf32>
    %108 = arith.addf %105, %107 : vector<2x128xf32>
    %109 = arith.negf %108 : vector<2x128xf32>
    %110 = math.exp %109 : vector<2x128xf32>
    %cst_26 = arith.constant 1.000000e+00 : f32
    %111 = vector.broadcast %cst_26 : f32 to vector<2x128xf32>
    %112 = arith.addf %111, %110 : vector<2x128xf32>
    %113 = arith.divf %111, %112 : vector<2x128xf32>
    %114 = math.tanh %108 : vector<2x128xf32>
    %115 = vector.extract_strided_slice %113 {offsets = [0, 0], sizes = [2, 32], strides = [1, 1]} : vector<2x128xf32> to vector<2x32xf32>
    %116 = vector.extract_strided_slice %113 {offsets = [0, 32], sizes = [2, 32], strides = [1, 1]} : vector<2x128xf32> to vector<2x32xf32>
    %117 = vector.extract_strided_slice %113 {offsets = [0, 96], sizes = [2, 32], strides = [1, 1]} : vector<2x128xf32> to vector<2x32xf32>
    %118 = vector.extract_strided_slice %114 {offsets = [0, 64], sizes = [2, 32], strides = [1, 1]} : vector<2x128xf32> to vector<2x32xf32>
    %119 = arith.mulf %116, %100 : vector<2x32xf32>
    %120 = arith.mulf %115, %118 : vector<2x32xf32>
    %121 = arith.addf %119, %120 : vector<2x32xf32>
    %122 = math.tanh %121 : vector<2x32xf32>
    %123 = arith.mulf %117, %122 : vector<2x32xf32>
    %124 = vector.extract_strided_slice %16 {offsets = [0, 640], sizes = [2, 128], strides = [1, 1]} : vector<2x1024xf32> to vector<2x128xf32>
    %125 = vector.broadcast %3 : vector<1x128xf32> to vector<2x128xf32>
    %126 = arith.addf %124, %125 : vector<2x128xf32>
    %127 = arith.truncf %123 : vector<2x32xf32> to vector<2x32xbf16>
    %cst_27 = arith.constant dense<0.000000e+00> : vector<2x128xf32>
    %128 = tpu.matmul %127, %0, %cst_27 {dimension_numbers = #tpu.dot_dimension_numbers<[1], [0], [0], [1], [0, 0, 1, 1], [], []>} : vector<2x32xbf16>, vector<32x128xbf16>, vector<2x128xf32> -> vector<2x128xf32>
    %129 = arith.addf %126, %128 : vector<2x128xf32>
    %130 = arith.negf %129 : vector<2x128xf32>
    %131 = math.exp %130 : vector<2x128xf32>
    %cst_28 = arith.constant 1.000000e+00 : f32
    %132 = vector.broadcast %cst_28 : f32 to vector<2x128xf32>
    %133 = arith.addf %132, %131 : vector<2x128xf32>
    %134 = arith.divf %132, %133 : vector<2x128xf32>
    %135 = math.tanh %129 : vector<2x128xf32>
    %136 = vector.extract_strided_slice %134 {offsets = [0, 0], sizes = [2, 32], strides = [1, 1]} : vector<2x128xf32> to vector<2x32xf32>
    %137 = vector.extract_strided_slice %134 {offsets = [0, 32], sizes = [2, 32], strides = [1, 1]} : vector<2x128xf32> to vector<2x32xf32>
    %138 = vector.extract_strided_slice %134 {offsets = [0, 96], sizes = [2, 32], strides = [1, 1]} : vector<2x128xf32> to vector<2x32xf32>
    %139 = vector.extract_strided_slice %135 {offsets = [0, 64], sizes = [2, 32], strides = [1, 1]} : vector<2x128xf32> to vector<2x32xf32>
    %140 = arith.mulf %137, %121 : vector<2x32xf32>
    %141 = arith.mulf %136, %139 : vector<2x32xf32>
    %142 = arith.addf %140, %141 : vector<2x32xf32>
    %143 = math.tanh %142 : vector<2x32xf32>
    %144 = arith.mulf %138, %143 : vector<2x32xf32>
    %145 = vector.extract_strided_slice %16 {offsets = [0, 768], sizes = [2, 128], strides = [1, 1]} : vector<2x1024xf32> to vector<2x128xf32>
    %146 = vector.broadcast %3 : vector<1x128xf32> to vector<2x128xf32>
    %147 = arith.addf %145, %146 : vector<2x128xf32>
    %148 = arith.truncf %144 : vector<2x32xf32> to vector<2x32xbf16>
    %cst_29 = arith.constant dense<0.000000e+00> : vector<2x128xf32>
    %149 = tpu.matmul %148, %0, %cst_29 {dimension_numbers = #tpu.dot_dimension_numbers<[1], [0], [0], [1], [0, 0, 1, 1], [], []>} : vector<2x32xbf16>, vector<32x128xbf16>, vector<2x128xf32> -> vector<2x128xf32>
    %150 = arith.addf %147, %149 : vector<2x128xf32>
    %151 = arith.negf %150 : vector<2x128xf32>
    %152 = math.exp %151 : vector<2x128xf32>
    %cst_30 = arith.constant 1.000000e+00 : f32
    %153 = vector.broadcast %cst_30 : f32 to vector<2x128xf32>
    %154 = arith.addf %153, %152 : vector<2x128xf32>
    %155 = arith.divf %153, %154 : vector<2x128xf32>
    %156 = math.tanh %150 : vector<2x128xf32>
    %157 = vector.extract_strided_slice %155 {offsets = [0, 0], sizes = [2, 32], strides = [1, 1]} : vector<2x128xf32> to vector<2x32xf32>
    %158 = vector.extract_strided_slice %155 {offsets = [0, 32], sizes = [2, 32], strides = [1, 1]} : vector<2x128xf32> to vector<2x32xf32>
    %159 = vector.extract_strided_slice %155 {offsets = [0, 96], sizes = [2, 32], strides = [1, 1]} : vector<2x128xf32> to vector<2x32xf32>
    %160 = vector.extract_strided_slice %156 {offsets = [0, 64], sizes = [2, 32], strides = [1, 1]} : vector<2x128xf32> to vector<2x32xf32>
    %161 = arith.mulf %158, %142 : vector<2x32xf32>
    %162 = arith.mulf %157, %160 : vector<2x32xf32>
    %163 = arith.addf %161, %162 : vector<2x32xf32>
    %164 = math.tanh %163 : vector<2x32xf32>
    %165 = arith.mulf %159, %164 : vector<2x32xf32>
    %166 = vector.extract_strided_slice %16 {offsets = [0, 896], sizes = [2, 128], strides = [1, 1]} : vector<2x1024xf32> to vector<2x128xf32>
    %167 = vector.broadcast %3 : vector<1x128xf32> to vector<2x128xf32>
    %168 = arith.addf %166, %167 : vector<2x128xf32>
    %169 = arith.truncf %165 : vector<2x32xf32> to vector<2x32xbf16>
    %cst_31 = arith.constant dense<0.000000e+00> : vector<2x128xf32>
    %170 = tpu.matmul %169, %0, %cst_31 {dimension_numbers = #tpu.dot_dimension_numbers<[1], [0], [0], [1], [0, 0, 1, 1], [], []>} : vector<2x32xbf16>, vector<32x128xbf16>, vector<2x128xf32> -> vector<2x128xf32>
    %171 = arith.addf %168, %170 : vector<2x128xf32>
    %172 = arith.negf %171 : vector<2x128xf32>
    %173 = math.exp %172 : vector<2x128xf32>
    %cst_32 = arith.constant 1.000000e+00 : f32
    %174 = vector.broadcast %cst_32 : f32 to vector<2x128xf32>
    %175 = arith.addf %174, %173 : vector<2x128xf32>
    %176 = arith.divf %174, %175 : vector<2x128xf32>
    %177 = math.tanh %171 : vector<2x128xf32>
    %178 = vector.extract_strided_slice %176 {offsets = [0, 0], sizes = [2, 32], strides = [1, 1]} : vector<2x128xf32> to vector<2x32xf32>
    %179 = vector.extract_strided_slice %176 {offsets = [0, 32], sizes = [2, 32], strides = [1, 1]} : vector<2x128xf32> to vector<2x32xf32>
    %180 = vector.extract_strided_slice %176 {offsets = [0, 96], sizes = [2, 32], strides = [1, 1]} : vector<2x128xf32> to vector<2x32xf32>
    %181 = vector.extract_strided_slice %177 {offsets = [0, 64], sizes = [2, 32], strides = [1, 1]} : vector<2x128xf32> to vector<2x32xf32>
    %182 = arith.mulf %179, %163 : vector<2x32xf32>
    %183 = arith.mulf %178, %181 : vector<2x32xf32>
    %184 = arith.addf %182, %183 : vector<2x32xf32>
    %185 = math.tanh %184 : vector<2x32xf32>
    %186 = arith.mulf %180, %185 : vector<2x32xf32>
    %187 = arith.truncf %186 : vector<2x32xf32> to vector<2x32xbf16>
    %cst_33 = arith.constant dense<0.000000e+00> : vector<2x128xf32>
    %188 = tpu.matmul %187, %1, %cst_33 {dimension_numbers = #tpu.dot_dimension_numbers<[1], [0], [0], [1], [0, 0, 1, 1], [], []>} : vector<2x32xbf16>, vector<32x128xbf16>, vector<2x128xf32> -> vector<2x128xf32>
    %189 = vector.broadcast %4 : vector<1x128xf32> to vector<2x128xf32>
    %190 = arith.addf %188, %189 : vector<2x128xf32>
    %cst_34 = arith.constant 0.000000e+00 : f32
    %191 = vector.broadcast %cst_34 : f32 to vector<2x128xf32>
    %192 = arith.maximumf %190, %191 : vector<2x128xf32>
    %193 = arith.truncf %192 : vector<2x128xf32> to vector<2x128xbf16>
    %cst_35 = arith.constant dense<0.000000e+00> : vector<2x128xf32>
    %194 = tpu.matmul %193, %2, %cst_35 {dimension_numbers = #tpu.dot_dimension_numbers<[1], [0], [0], [1], [0, 0, 1, 1], [], []>} : vector<2x128xbf16>, vector<128x128xbf16>, vector<2x128xf32> -> vector<2x128xf32>
    %195 = vector.broadcast %5 : vector<1x128xf32> to vector<2x128xf32>
    %196 = arith.addf %194, %195 : vector<2x128xf32>
    %c0_36 = arith.constant 0 : index
    %c0_37 = arith.constant 0 : index
    %197 = vector.load %arg6[%c0_36, %c0_37] : memref<2x128xf32, #tpu.memory_space<vmem>>, vector<2x128xf32>
    tpu.vector_store %arg6[%c0_36, %c0_37], %196 {strides = array<i32>} : memref<2x128xf32, #tpu.memory_space<vmem>>, vector<2x128xf32>,
    return
  }
  func.func @transform_0(%arg0: i32) -> (i32, i32) {
    %c0_i32 = arith.constant 0 : i32
    %c0_i32_0 = arith.constant 0 : i32
    return %arg0, %c0_i32 : i32, i32
  }
  func.func @transform_1(%arg0: i32) -> (i32, i32) {
    %c0_i32 = arith.constant 0 : i32
    %c0_i32_0 = arith.constant 0 : i32
    %c0_i32_1 = arith.constant 0 : i32
    return %c0_i32, %c0_i32_0 : i32, i32
  }
  func.func @transform_2(%arg0: i32) -> (i32, i32) {
    %c0_i32 = arith.constant 0 : i32
    %c0_i32_0 = arith.constant 0 : i32
    %c0_i32_1 = arith.constant 0 : i32
    return %c0_i32, %c0_i32_0 : i32, i32
  }
  func.func @transform_3(%arg0: i32) -> (i32, i32) {
    %c0_i32 = arith.constant 0 : i32
    %c0_i32_0 = arith.constant 0 : i32
    %c0_i32_1 = arith.constant 0 : i32
    return %c0_i32, %c0_i32_0 : i32, i32
  }
  func.func @transform_4(%arg0: i32) -> (i32, i32) {
    %c0_i32 = arith.constant 0 : i32
    %c0_i32_0 = arith.constant 0 : i32
    %c0_i32_1 = arith.constant 0 : i32
    return %c0_i32, %c0_i32_0 : i32, i32
  }
  func.func @transform_5(%arg0: i32) -> (i32, i32) {
    %c0_i32 = arith.constant 0 : i32
    %c0_i32_0 = arith.constant 0 : i32
    return %arg0, %c0_i32 : i32, i32
  }
}

</mosaic_0001>

<bundles_post_ra>
// kernel: tile.8
= control target key start
LH: loop header
LB: loop body
LE: loop exit
PB: predicated region body
PF: predicated region fallthrough
CT: control target
= control target key end

     0   :  { %s28_s0 = inlined_call_operand.vmem [shape: f32[16], index: 0, kind: input, shape index: {}]   ;;  %s29_s1 = inlined_call_operand.vmem [shape: f32[16,16], index: 1, kind: output, shape index: {}]  }
   0x1   :  { %v4_v0 = vld [vmem:[%s28_s0] ss:$0 sm:$0xff] }
   0x2   :  { %5 = vst [vmem:[%s29_s1] sm:$0xff] %v4_v0  ;;  %8 = vst [vmem:[%s29_s1 + $0x8] sm:$0xff] %v4_v0 }

// kernel: tile.9
= control target key start
LH: loop header
LB: loop body
LE: loop exit
PB: predicated region body
PF: predicated region fallthrough
CT: control target
= control target key end

     0   :  { %s7_s6 = smov 3  ;;  %s21_s9 = smov 3  ;;  %vm4_vm0 = vcmask 130048   ;;  %vm11_vm1 = vcmask 1048448   ;;  %vm18_vm2 = vcmask 917248   ;;  %vm25_vm3 = vcmask 786048   ;;  %s128_s0 = inlined_call_operand.vmem [shape: f32[16,16], index: 0, kind: input, shape index: {}]   ;;  %s129_s1 = inlined_call_operand.vmem [shape: f32[1,256], index: 1, kind: output, shape index: {}]  }
   0x1   :  { %v66_v0 = vld [vmem:[%s128_s0 + $0x7] ss:$8 sm:%s7_s6]   ;;  %s81_s10 = smov 112   ;;  %v68_v1 = vld [vmem:[%s128_s0 + $0x5] ss:$8 sm:%s21_s9]   ;;  %s14_s13 = smov 3 }
   0x2   :  { %9 = vrot.lane.b32.xlu0 %v66_v0, %s81_s10  ;;  %s82_s14 = smov 80   ;;  %v67_v2 = vld [vmem:[%s128_s0 + $0x6] ss:$8 sm:%s14_s13]   ;;  %s28_s17 = smov 3  ;;  %vm32_vm4 = vcmask 654848   ;;  %vm39_vm5 = vcmask 523648  }
   0x3   :  { %23 = vrot.lane.b32.xlu1 %v68_v1, %s82_s14  ;;  %v69_v3 = vld [vmem:[%s128_s0 + $0x4] ss:$8 sm:%s28_s17]   ;;  %s35_s20 = smov 3  ;;  %s42_s21 = smov 3  ;;  %vm46_vm6 = vcmask 392448   ;;  %vm53_vm7 = vcmask 261248  }
   0x4   :  { %s83_s22 = smov 96   ;;  %s84_s23 = smov 64   ;;  %v70_v4 = vld [vmem:[%s128_s0 + $0x3] ss:$8 sm:%s35_s20]   ;;  %v71_v5 = vld [vmem:[%s128_s0 + $0x2] ss:$8 sm:%s42_s21]  }
   0x5   :  { %s2_s26 = smov 3  ;;  %s49_s29 = smov 3 }
   0x6   :  { %16 = vrot.lane.b32.xlu0 %v67_v2, %s83_s22  ;;  %v3_v6 = vld [vmem:[%s128_s0] ss:$8 sm:%s2_s26]   ;;  %s85_s3 = smov 48   ;;  %s86_s4 = smov 32  }
   0x7   :  { %30 = vrot.lane.b32.xlu1 %v69_v3, %s84_s23  ;;  %5 = vst.msk [vmem:[#allocation0] ss:$8 sm:$0x3] %vm4_vm0, %v3_v6   ;;  %v72_v7 = vld [vmem:[%s128_s0 + $0x1] ss:$8 sm:%s49_s29]   ;;  %s87_s0 = smov 16  }
   0xa   :  { %37 = vrot.lane.b32.xlu0 %v70_v4, %s85_s3 }
   0xb   :  { %44 = vrot.lane.b32.xlu1 %v71_v5, %s86_s4 }
   0xe   :  { %51 = vrot.lane.b32.xlu0 %v72_v7, %s87_s0 }
  0x74   :  { %v10_v8 = vpop.permute.xlu0 %9  }
  0x75   :  { %12 = vst.msk [vmem:[#allocation0] ss:$8 sm:$0x3] %vm11_vm1, %v10_v8   ;;  %v24_v9 = vpop.permute.xlu1 %23  }
  0x78   :  { %v17_v10 = vpop.permute.xlu0 %16  }
  0x79   :  { %19 = vst.msk [vmem:[#allocation0] ss:$8 sm:$0x3] %vm18_vm2, %v17_v10   ;;  %v31_v11 = vpop.permute.xlu1 %30  }
  0x7a   :  { %26 = vst.msk [vmem:[#allocation0] ss:$8 sm:$0x3] %vm25_vm3, %v24_v9  }
  0x7b   :  { %33 = vst.msk [vmem:[#allocation0] ss:$8 sm:$0x3] %vm32_vm4, %v31_v11  }
  0x7c   :  { %v38_v12 = vpop.permute.xlu0 %37  }
  0x7d   :  { %40 = vst.msk [vmem:[#allocation0] ss:$8 sm:$0x3] %vm39_vm5, %v38_v12   ;;  %v45_v13 = vpop.permute.xlu1 %44  }
  0x7e   :  { %47 = vst.msk [vmem:[#allocation0] ss:$8 sm:$0x3] %vm46_vm6, %v45_v13  }
  0x80   :  { %v52_v14 = vpop.permute.xlu0 %51  }
  0x81   :  { %54 = vst.msk [vmem:[#allocation0] ss:$8 sm:$0x3] %vm53_vm7, %v52_v14  }
  0x88   :  { %v58_v15 = vld [vmem:[#allocation0] sm:$0x1]  ;;  %v62_v16 = vld [vmem:[#allocation0 + $0x8] sm:$0x1] }
  0x89   :  { %60 = vst [vmem:[%s129_s1] sm:$0x1] %v58_v15  ;;  %73 = vst [vmem:[%s129_s1 + $0x1] sm:$0x1] %v62_v16 }

// kernel: cnn_lstm_forward.1
= control target key start
LH: loop header
LB: loop body
LE: loop exit
PB: predicated region body
PF: predicated region fallthrough
CT: control target
= control target key end

     0   :  { %v1795_v5 = vmov 0.0   ;;  %vm60_vm0 = vcmask 1042432   ;;  %vm56_vm1 = vcmask 154624   ;;  %s2239_s0 = inlined_call_operand.vmem [shape: f32[2,19], index: 0, kind: input, shape index: {}]   ;;  %s2240_s1 = inlined_call_operand.vmem [shape: f32[19,256], index: 1, kind: input, shape index: {}]   ;;  %s2241_s2 = inlined_call_operand.vmem [shape: bf16[128,1024], index: 2, kind: input, shape index: {}]   ;;  %s2242_s3 = inlined_call_operand.vmem [shape: bf16[192,128], index: 3, kind: input, shape index: {}]   ;;  %s2243_s4 = inlined_call_operand.vmem [shape: f32[3,128], index: 4, kind: input, shape index: {}]   ;;  %s2244_s5 = inlined_call_operand.hbm [shape: f32[2,128], index: 5, kind: output, shape index: {}]  }
   0x1   :  { %v51_v0 = vld [vmem:[%s2240_s1 + $0x8] sm:$0xff]  ;;  %v53_v1 = vld [vmem:[%s2240_s1 + $0x18] sm:$0xff]  ;;  %v50_v2 = vld [vmem:[%s2240_s1] sm:$0xff]  ;;  %131 = vmatprep.mubr.f32.mxu1 %v1795_v5 }
   0x2   :  { %v1685_v3 = vpack.c.bf16 %v53_v1, %v51_v0  ;;  %v52_v4 = vld [vmem:[%s2240_s1 + $0x10] sm:$0xff]  ;;  %v55_v7 = vld [vmem:[%s2240_s1 + $0x28] sm:$0x7]  ;;  %v142_v8 = vld [vmem:[%s2241_s2] sm:$0xff] }
   0x3   :  { %v1687_v6 = vpack.c.bf16 %v52_v4, %v50_v2  ;;  %v146_v9 = vld [vmem:[%s2241_s2 + $0x20] sm:$0xff]  ;;  %v143_v10 = vld [vmem:[%s2241_s2 + $0x8] sm:$0xff] }
   0x4   :  { %1686 = vmatprep.subr.bf16.mxu1 %v1685_v3  ;;  %v147_v11 = vld [vmem:[%s2241_s2 + $0x28] sm:$0xff]  ;;  %v150_v12 = vld [vmem:[%s2241_s2 + $0x40] sm:$0xff]  ;;  %v1463_v19 = vcombine.high %v142_v8, %v146_v9  ;;  %v1462_v23 = vcombine.low %v142_v8, %v146_v9 }
   0x5   :  { %1688 = vmatpush1.bf16.msra.mxu1 %v1687_v6  ;;  %v1465_v13 = vcombine.high %v143_v10, %v147_v11  ;;  %v1464_v14 = vcombine.low %v143_v10, %v147_v11  ;;  %v154_v15 = vld [vmem:[%s2241_s2 + $0x60] sm:$0xff]  ;;  %v151_v16 = vld [vmem:[%s2241_s2 + $0x48] sm:$0xff] }
   0x6   :  { %v155_v17 = vld [vmem:[%s2241_s2 + $0x68] sm:$0xff]  ;;  %1459 = vmatprep.subr.msk.mxu1 %vm60_vm0, %v55_v7  ;;  %v54_v18 = vld [vmem:[%s2240_s1 + $0x20] sm:$0x7]  ;;  %v1471_v25 = vcombine.high %v150_v12, %v154_v15  ;;  %v1470_v32 = vcombine.low %v150_v12, %v154_v15 }
   0x7   :  { %v1473_v20 = vcombine.high %v151_v16, %v155_v17  ;;  %v159_v21 = vld [vmem:[%s2241_s2 + $0x88] sm:$0xff]  ;;  %v49_v22 = vld [vmem:[%s2239_s0] sm:$0x3]  ;;  %567 = vmatprep.subr.bf16.mxu0 %v1465_v13  ;;  %v1472_v26 = vcombine.low %v151_v16, %v155_v17 }
   0x8   :  { %v163_v24 = vld [vmem:[%s2241_s2 + $0xa8] sm:$0xff]  ;;  %568 = vmatpush1.bf16.msra.mxu0 %v1464_v14  ;;  %v158_v27 = vld [vmem:[%s2241_s2 + $0x80] sm:$0xff] }
   0x9   :  { %1460 = vmatpush1.msk.msra.mxu1 %vm60_vm0, %v54_v18  ;;  %569 = vmatprep.subr.bf16.mxu0 %v1473_v20  ;;  %v162_v28 = vld [vmem:[%s2241_s2 + $0xa0] sm:$0xff]  ;;  %v1481_v29 = vcombine.high %v159_v21, %v163_v24  ;;  %v167_v30 = vld [vmem:[%s2241_s2 + $0xc8] sm:$0xff]  ;;  %v1480_v36 = vcombine.low %v159_v21, %v163_v24 }
   0xa   :  { %1461 = vmatmul.mubr.msk.f32.vlgmr.msra.gmra.mrb[0].mxu1 %vm56_vm1, %v49_v22  ;;  %526 = vmatprep.subr.bf16.mxu1 %v1463_v19  ;;  %v171_v31 = vld [vmem:[%s2241_s2 + $0xe8] sm:$0xff]  ;;  %v166_v33 = vld [vmem:[%s2241_s2 + $0xc0] sm:$0xff]  ;;  %v1479_v35 = vcombine.high %v158_v27, %v162_v28  ;;  %v1478_v40 = vcombine.low %v158_v27, %v162_v28 }
   0xb   :  { %527 = vmatpush1.bf16.msra.mxu1 %v1462_v23  ;;  %v170_v34 = vld [vmem:[%s2241_s2 + $0xe0] sm:$0xff]  ;;  %v175_v37 = vld [vmem:[%s2241_s2 + $0x108] sm:$0xff]  ;;  %v1489_v39 = vcombine.high %v167_v30, %v171_v31  ;;  %v1488_v44 = vcombine.low %v167_v30, %v171_v31 }
   0xc   :  { %528 = vmatprep.subr.bf16.mxu1 %v1471_v25  ;;  %570 = vmatpush1.bf16.msra.mxu0 %v1472_v26  ;;  %v179_v38 = vld [vmem:[%s2241_s2 + $0x128] sm:$0xff]  ;;  %v174_v41 = vld [vmem:[%s2241_s2 + $0x100] sm:$0xff]  ;;  %v1487_v43 = vcombine.high %v166_v33, %v170_v34  ;;  %v1486_v48 = vcombine.low %v166_v33, %v170_v34 }
   0xd   :  { %571 = vmatprep.subr.bf16.mxu0 %v1481_v29  ;;  %v178_v42 = vld [vmem:[%s2241_s2 + $0x120] sm:$0xff]  ;;  %v183_v45 = vld [vmem:[%s2241_s2 + $0x148] sm:$0xff]  ;;  %v1497_v47 = vcombine.high %v175_v37, %v179_v38  ;;  %v1496_v50 = vcombine.low %v175_v37, %v179_v38 }
   0xe   :  { %v187_v46 = vld [vmem:[%s2241_s2 + $0x168] sm:$0xff]  ;;  %v1495_v49 = vcombine.high %v174_v41, %v178_v42 }
   0xf   :  { %529 = vmatpush1.bf16.msra.mxu1 %v1470_v32 }
  0x10   :  { %530 = vmatprep.subr.bf16.mxu1 %v1479_v35  ;;  %572 = vmatpush1.bf16.msra.mxu0 %v1480_v36 }
  0x11   :  { %573 = vmatprep.subr.bf16.mxu0 %v1489_v39 }
  0x13   :  { %531 = vmatpush1.bf16.msra.mxu1 %v1478_v40 }
  0x14   :  { %532 = vmatprep.subr.bf16.mxu1 %v1487_v43  ;;  %574 = vmatpush1.bf16.msra.mxu0 %v1488_v44 }
  0x15   :  { %10 = vsyncpa [#allocation3], 0  ;;  %575 = vmatprep.subr.bf16.mxu0 %v1497_v47  ;;  %v182_v51 = vld [vmem:[%s2241_s2 + $0x140] sm:$0xff]  ;;  %v1505_v53 = vcombine.high %v183_v45, %v187_v46  ;;  %v191_v54 = vld [vmem:[%s2241_s2 + $0x188] sm:$0xff]  ;;  %v1494_v56 = vcombine.low %v174_v41, %v178_v42  ;;  %v1504_v58 = vcombine.low %v183_v45, %v187_v46  ;;  %v1796_v19 = vmov 0   ;;  %s1798_s30 = smov 64  }
  0x16   :  { %v186_v52 = vld [vmem:[%s2241_s2 + $0x160] sm:$0xff]  ;;  %v195_v55 = vld [vmem:[%s2241_s2 + $0x1a8] sm:$0xff]  ;;  %v144_v11 = vld [vmem:[%s2241_s2 + $0x10] sm:$0xff]  ;;  %558 = vmatprep.mubr.bf16.mxu1 %v1796_v19  ;;  %599 = vmatprep.mubr.bf16.mxu0 %v1796_v19  ;;  %vm1797_vm2 = vmmov 0   ;;  %s1799_s6 = smov 32   ;;  %vm707_vm3 = vcmask 261120  }
  0x17   :  { %533 = vmatpush1.bf16.msra.mxu1 %v1486_v48  ;;  %v1503_v57 = vcombine.high %v182_v51, %v186_v52  ;;  %v190_v59 = vld [vmem:[%s2241_s2 + $0x180] sm:$0xff]  ;;  %v1513_v61 = vcombine.high %v191_v54, %v195_v55  ;;  %v1502_v62 = vcombine.low %v182_v51, %v186_v52  ;;  %v1512_v1 = vcombine.low %v191_v54, %v195_v55  ;;  %v199_v4 = vld [vmem:[%s2241_s2 + $0x1c8] sm:$0xff]  ;;  %v148_v12 = vld [vmem:[%s2241_s2 + $0x30] sm:$0xff]  ;;  %s1800_s29 = smov [#allocation2]  }
  0x18   :  { %534 = vmatprep.subr.bf16.mxu1 %v1495_v49  ;;  %576 = vmatpush1.bf16.msra.mxu0 %v1496_v50  ;;  %v194_v60 = vld [vmem:[%s2241_s2 + $0x1a0] sm:$0xff]  ;;  %v203_v7 = vld [vmem:[%s2241_s2 + $0x1e8] sm:$0xff]  ;;  %v145_v13 = vld [vmem:[%s2241_s2 + $0x18] sm:$0xff]  ;;  %v1467_v14 = vcombine.high %v144_v11, %v148_v12  ;;  %v1466_v16 = vcombine.low %v144_v11, %v148_v12  ;;  %s1451_s0 = sshll.u32 %s1800_s29, 4  ;;  %s1452_s0 = int_to_ptr.vmem [resolvable:$true] %s1451_s0 }
  0x19   :  { %577 = vmatprep.subr.bf16.mxu0 %v1505_v53  ;;  %v1511_v63 = vcombine.high %v190_v59, %v194_v60  ;;  %v1510_v0 = vcombine.low %v190_v59, %v194_v60  ;;  %v198_v2 = vld [vmem:[%s2241_s2 + $0x1c0] sm:$0xff]  ;;  %v1521_v9 = vcombine.high %v199_v4, %v203_v7  ;;  %v1520_v10 = vcombine.low %v199_v4, %v203_v7  ;;  %v149_v15 = vld [vmem:[%s2241_s2 + $0x38] sm:$0xff]  ;;  %v152_v24 = vld [vmem:[%s2241_s2 + $0x50] sm:$0xff]  ;;  %p1776_p1 = scmp.lt.s32.totalorder %s1452_s0, %s1452_s0 }
  0x1a   :  { %v202_v3 = vld [vmem:[%s2241_s2 + $0x1e0] sm:$0xff]  ;;  %v1468_v17 = vcombine.low %v145_v13, %v149_v15  ;;  %v1469_v18 = vcombine.high %v145_v13, %v149_v15  ;;  %v156_v25 = vld [vmem:[%s2241_s2 + $0x70] sm:$0xff]  ;;  %v153_v26 = vld [vmem:[%s2241_s2 + $0x58] sm:$0xff] }
  0x1b   :  { %535 = vmatpush1.bf16.msra.mxu1 %v1494_v56  ;;  %v1519_v6 = vcombine.high %v198_v2, %v202_v3  ;;  %v1518_v8 = vcombine.low %v198_v2, %v202_v3  ;;  %v157_v27 = vld [vmem:[%s2241_s2 + $0x78] sm:$0xff]  ;;  %v1475_v30 = vcombine.high %v152_v24, %v156_v25  ;;  %v160_v32 = vld [vmem:[%s2241_s2 + $0x90] sm:$0xff]  ;;  %v1474_v36 = vcombine.low %v152_v24, %v156_v25 }
  0x1c   :  { %536 = vmatprep.subr.bf16.mxu1 %v1503_v57  ;;  %578 = vmatpush1.bf16.msra.mxu0 %v1504_v58  ;;  %v1477_v31 = vcombine.high %v153_v26, %v157_v27  ;;  %v164_v33 = vld [vmem:[%s2241_s2 + $0xb0] sm:$0xff]  ;;  %v161_v34 = vld [vmem:[%s2241_s2 + $0x98] sm:$0xff]  ;;  %v1476_v37 = vcombine.low %v153_v26, %v157_v27 }
  0x1d   :  { %579 = vmatprep.subr.bf16.mxu0 %v1513_v61  ;;  %v165_v35 = vld [vmem:[%s2241_s2 + $0xb8] sm:$0xff]  ;;  %v1483_v38 = vcombine.high %v160_v32, %v164_v33  ;;  %v168_v40 = vld [vmem:[%s2241_s2 + $0xd0] sm:$0xff]  ;;  %v1482_v44 = vcombine.low %v160_v32, %v164_v33 }
  0x1e   :  { %v1485_v39 = vcombine.high %v161_v34, %v165_v35  ;;  %v172_v41 = vld [vmem:[%s2241_s2 + $0xf0] sm:$0xff]  ;;  %v169_v42 = vld [vmem:[%s2241_s2 + $0xd8] sm:$0xff]  ;;  %v1484_v45 = vcombine.low %v161_v34, %v165_v35 }
  0x1f   :  { %537 = vmatpush1.bf16.msra.mxu1 %v1502_v62  ;;  %v173_v43 = vld [vmem:[%s2241_s2 + $0xf8] sm:$0xff]  ;;  %v1491_v46 = vcombine.high %v168_v40, %v172_v41  ;;  %v176_v48 = vld [vmem:[%s2241_s2 + $0x110] sm:$0xff]  ;;  %v1490_v52 = vcombine.low %v168_v40, %v172_v41 }
  0x20   :  { %538 = vmatprep.subr.bf16.mxu1 %v1511_v63  ;;  %580 = vmatpush1.bf16.msra.mxu0 %v1512_v1  ;;  %v1493_v47 = vcombine.high %v169_v42, %v173_v43  ;;  %v180_v49 = vld [vmem:[%s2241_s2 + $0x130] sm:$0xff]  ;;  %v177_v50 = vld [vmem:[%s2241_s2 + $0x118] sm:$0xff]  ;;  %v1492_v53 = vcombine.low %v169_v42, %v173_v43 }
  0x21   :  { %581 = vmatprep.subr.bf16.mxu0 %v1521_v9  ;;  %v181_v51 = vld [vmem:[%s2241_s2 + $0x138] sm:$0xff]  ;;  %v1499_v54 = vcombine.high %v176_v48, %v180_v49  ;;  %v184_v56 = vld [vmem:[%s2241_s2 + $0x150] sm:$0xff]  ;;  %v1498_v60 = vcombine.low %v176_v48, %v180_v49 }
  0x22   :  { %v1501_v55 = vcombine.high %v177_v50, %v181_v51  ;;  %v188_v57 = vld [vmem:[%s2241_s2 + $0x170] sm:$0xff]  ;;  %v185_v58 = vld [vmem:[%s2241_s2 + $0x158] sm:$0xff]  ;;  %v1500_v61 = vcombine.low %v177_v50, %v181_v51 }
  0x23   :  { %539 = vmatpush1.bf16.msra.mxu1 %v1510_v0  ;;  %v189_v59 = vld [vmem:[%s2241_s2 + $0x178] sm:$0xff]  ;;  %v1507_v62 = vcombine.high %v184_v56, %v188_v57  ;;  %v192_v0 = vld [vmem:[%s2241_s2 + $0x190] sm:$0xff]  ;;  %v1506_v4 = vcombine.low %v184_v56, %v188_v57 }
  0x24   :  { %540 = vmatprep.subr.bf16.mxu1 %v1519_v6  ;;  %582 = vmatpush1.bf16.msra.mxu0 %v1520_v10  ;;  %v1509_v63 = vcombine.high %v185_v58, %v189_v59  ;;  %v196_v1 = vld [vmem:[%s2241_s2 + $0x1b0] sm:$0xff]  ;;  %v193_v2 = vld [vmem:[%s2241_s2 + $0x198] sm:$0xff]  ;;  %v1508_v6 = vcombine.low %v185_v58, %v189_v59 }
  0x25   :  { %649 = vmatprep.subr.bf16.mxu0 %v1469_v18  ;;  %v197_v3 = vld [vmem:[%s2241_s2 + $0x1b8] sm:$0xff]  ;;  %v1515_v7 = vcombine.high %v192_v0, %v196_v1  ;;  %v200_v9 = vld [vmem:[%s2241_s2 + $0x1d0] sm:$0xff]  ;;  %v1514_v13 = vcombine.low %v192_v0, %v196_v1 }
  0x26   :  { %v204_v10 = vld [vmem:[%s2241_s2 + $0x1f0] sm:$0xff]  ;;  %v201_v11 = vld [vmem:[%s2241_s2 + $0x1d8] sm:$0xff] }
  0x27   :  { %541 = vmatpush1.bf16.msra.mxu1 %v1518_v8  ;;  %v1517_v8 = vcombine.high %v193_v2, %v197_v3  ;;  %v205_v12 = vld [vmem:[%s2241_s2 + $0x1f8] sm:$0xff]  ;;  %v1523_v15 = vcombine.high %v200_v9, %v204_v10 }
  0x28   :  { %608 = vmatprep.subr.bf16.mxu1 %v1467_v14  ;;  %v1516_v14 = vcombine.low %v193_v2, %v197_v3  ;;  %v1524_v18 = vcombine.low %v201_v11, %v205_v12 }
  0xdd   :  { %v133_v20 = vpop.f32.mrb[0].mxu1 }
  0xde   :  { %v138_v21 = vmax.f32 %v133_v20, 0.0  ;;  %v135_v22 = vpop.f32.mrb[1].mxu1  ;;  %v2058_v20 = vld [vmem:[%s2242_s3] sm:$0xff]  }
  0xdf   :  { %v139_v23 = vmax.f32 %v135_v22, 0.0  ;;  %v1526_v22 = vld [vmem:[%s2243_s4] ss:$0 sm:$0xff] }
  0xe1   :  { %v140_v28 = vmax.f32 %v138_v21, %v139_v23  ;;  %v2068_v21 = vld [vmem:[%s2242_s3 + $0x8] sm:$0xff]  }
  0xe3   :  { %v1977_v29 = vpack.c.bf16 %v140_v28, %v140_v28 }
  0xe5   :  { %559 = vmatmul.mubr.bf16.vlgmr.msra.gmra.mrb[4].mxu1 %v1977_v29  ;;  %600 = vmatmul.mubr.bf16.vlgmr.msra.gmra.mrb[0].mxu0 %v1977_v29 }
  0xe6   :  { %609 = vmatpush1.bf16.msra.mxu1 %v1466_v16  ;;  %650 = vmatpush1.bf16.msra.mxu0 %v1468_v17  ;;  %v1525_v16 = vcombine.high %v201_v11, %v205_v12  ;;  %v1522_v17 = vcombine.low %v200_v9, %v204_v10 }
  0xe7   :  { %610 = vmatprep.subr.bf16.mxu1 %v1475_v30  ;;  %651 = vmatprep.subr.bf16.mxu0 %v1477_v31 }
  0xe8   :  { %640 = vmatprep.mubr.bf16.mxu1 %v1796_v19  ;;  %681 = vmatprep.mubr.bf16.mxu0 %v1796_v19 }
  0xea   :  { %611 = vmatpush1.bf16.msra.mxu1 %v1474_v36  ;;  %652 = vmatpush1.bf16.msra.mxu0 %v1476_v37 }
  0xeb   :  { %612 = vmatprep.subr.bf16.mxu1 %v1483_v38  ;;  %653 = vmatprep.subr.bf16.mxu0 %v1485_v39 }
  0xee   :  { %613 = vmatpush1.bf16.msra.mxu1 %v1482_v44  ;;  %654 = vmatpush1.bf16.msra.mxu0 %v1484_v45 }
  0xef   :  { %614 = vmatprep.subr.bf16.mxu1 %v1491_v46  ;;  %655 = vmatprep.subr.bf16.mxu0 %v1493_v47 }
  0xf2   :  { %615 = vmatpush1.bf16.msra.mxu1 %v1490_v52  ;;  %656 = vmatpush1.bf16.msra.mxu0 %v1492_v53 }
  0xf3   :  { %616 = vmatprep.subr.bf16.mxu1 %v1499_v54  ;;  %657 = vmatprep.subr.bf16.mxu0 %v1501_v55 }
  0xf6   :  { %617 = vmatpush1.bf16.msra.mxu1 %v1498_v60  ;;  %658 = vmatpush1.bf16.msra.mxu0 %v1500_v61 }
  0xf7   :  { %618 = vmatprep.subr.bf16.mxu1 %v1507_v62  ;;  %659 = vmatprep.subr.bf16.mxu0 %v1509_v63 }
  0xfa   :  { %619 = vmatpush1.bf16.msra.mxu1 %v1506_v4  ;;  %660 = vmatpush1.bf16.msra.mxu0 %v1508_v6 }
  0xfb   :  { %620 = vmatprep.subr.bf16.mxu1 %v1515_v7  ;;  %661 = vmatprep.subr.bf16.mxu0 %v1517_v8 }
  0xfe   :  { %621 = vmatpush1.bf16.msra.mxu1 %v1514_v13  ;;  %662 = vmatpush1.bf16.msra.mxu0 %v1516_v14 }
  0xff   :  { %622 = vmatprep.subr.bf16.mxu1 %v1523_v15  ;;  %663 = vmatprep.subr.bf16.mxu0 %v1525_v16 }
 0x102   :  { %623 = vmatpush1.bf16.msra.mxu1 %v1522_v17  ;;  %664 = vmatpush1.bf16.msra.mxu0 %v1524_v18 }
 0x103   :  { %1593 = vmatprep.subr.bf16.mxu1 %v1795_v5  ;;  %1617 = vmatprep.subr.bf16.mxu0 %v1795_v5 }
 0x105   :  { %641 = vmatmul.mubr.bf16.vlgmr.msra.gmra.mrb[8].mxu1 %v1977_v29  ;;  %682 = vmatmul.mubr.bf16.vlgmr.msra.gmra.mrb[4].mxu0 %v1977_v29 }
 0x106   :  { %1594 = vmatpush3.bf16.msra.mxu1 %v2058_v20  ;;  %1597 = vmatprep.mubr.msk.bf16.mxu1 %vm1797_vm2, %v1795_v5 }
 0x107   :  { %1595 = vmatprep.subr.bf16.mxu1 %v1795_v5  ;;  %1618 = vmatpush3.bf16.msra.mxu0 %v2058_v20 }
 0x108   :  { %1619 = vmatprep.subr.bf16.mxu0 %v1795_v5  ;;  %1621 = vmatprep.mubr.msk.bf16.mxu0 %vm1797_vm2, %v1795_v5 }
 0x10a   :  { %1596 = vmatpush3.bf16.msra.mxu1 %v2068_v21 }
 0x10b   :  { %1601 = vmatprep.subr.bf16.mxu1 %v1795_v5  ;;  %1620 = vmatpush3.bf16.msra.mxu0 %v2068_v21 }
 0x10c   :  { %1633 = vmatprep.subr.bf16.mxu0 %v1795_v5 }
 0x10d   :  { %1598 = vmatmul.mubr.bf16.vlgmr.msra.gmra.mrb[12].mxu1 %v1796_v19 }
 0x10e   :  { %1602 = vmatpush3.bf16.msra.mxu1 %v2058_v20  ;;  %1605 = vmatprep.mubr.msk.bf16.mxu1 %vm1797_vm2, %v1795_v5 }
 0x10f   :  { %1603 = vmatprep.subr.bf16.mxu1 %v1795_v5 }
 0x112   :  { %1604 = vmatpush3.bf16.msra.mxu1 %v2068_v21 }
 0x113   :  { %1609 = vmatprep.subr.bf16.mxu1 %v1795_v5 }
 0x1b8   :  { %v560_v23 = vpop.f32.mrb[4].mxu1  ;;  %v601_v24 = vpop.f32.mrb[0].mxu0 }
 0x1b9   :  { %v2091_v25 = vadd.f32 %v1526_v22, %v601_v24  ;;  %v562_v19 = vpop.f32.mrb[5].mxu1  ;;  %v603_v26 = vpop.f32.mrb[1].mxu0  ;;  %v694_v45 = vadd.f32 %v1526_v22, %v560_v23 }
 0x1ba   :  { %v776_v27 = vadd.f32 %v1526_v22, %v562_v19  ;;  %v2093_v28 = vadd.f32 %v1526_v22, %v603_v26  ;;  %v564_v29 = vpop.f32.mrb[6].mxu1  ;;  %v605_v30 = vpop.f32.mrb[2].mxu0 }
 0x1bb   :  { %v565_v31 = vpop.f32.mrb[7].mxu1  ;;  %v606_v32 = vpop.f32.mrb[3].mxu0 }
 0x1d8   :  { %v642_v33 = vpop.f32.mrb[8].mxu1  ;;  %v683_v34 = vpop.f32.mrb[4].mxu0 }
 0x1d9   :  { %v2095_v35 = vadd.f32 %v1526_v22, %v642_v33  ;;  %v2097_v36 = vadd.f32 %v1526_v22, %v683_v34  ;;  %v644_v37 = vpop.f32.mrb[9].mxu1  ;;  %v685_v38 = vpop.f32.mrb[5].mxu0 }
 0x1da   :  { %v2099_v39 = vadd.f32 %v1526_v22, %v644_v37  ;;  %v2101_v40 = vadd.f32 %v1526_v22, %v685_v38  ;;  %v646_v41 = vpop.f32.mrb[10].mxu1  ;;  %v687_v42 = vpop.f32.mrb[6].mxu0 }
 0x1db   :  { %v647_v43 = vpop.f32.mrb[11].mxu1  ;;  %v688_v44 = vpop.f32.mrb[7].mxu0 }
 0x1e0   :  { %v745_v46 = vpop.f32.mrb[12].mxu1 }
 0x1e1   :  { %v751_v47 = vadd.f32 %v745_v46, %v694_v45  ;;  %v1599_v48 = vpop.f32.mrb[13].mxu1 }
 0x1e2   :  { %v748_v49 = vpop.f32.mrb[14].mxu1 }
 0x1e3   :  { %1707 = vtanh.f32 %v751_v47  ;;  %v1600_v50 = vpop.f32.mrb[15].mxu1  ;;  %v1529_v52 = vmul.f32 -1.442695, %v751_v47 }
 0x1e5   :  { %1709 = vpow2.f32 %v1529_v52 }
 0x1ed   :  { %v1708_v51 = vpop.eup %1707 }
 0x1ee   :  { %761 = vrot.lane.b32.xlu0 %v1708_v51, %s1798_s30 }
 0x1ef   :  { %v1710_v53 = vpop.eup %1709 }
 0x1f0   :  { %v755_v54 = vadd.f32 1.0, %v1710_v53 }
 0x1f2   :  { %1711 = vrcp.f32 %v755_v54 }
 0x1fc   :  { %v1712_v55 = vpop.eup %1711 }
 0x1fd   :  { %v759_v58 = vmul.f32 0.0, %v1712_v55 }
 0x260   :  { %v762_v56 = vpop.permute.xlu0 %761 }
 0x261   :  { %v764_v57 = vmul.f32 %v1712_v55, %v762_v56 }
 0x263   :  { %766 = vrot.lane.b32.xlu0 %v764_v57, %s1799_s6 }
 0x2d5   :  { %v767_v59 = vpop.permute.xlu0 %766 }
 0x2d6   :  { %v769_v60 = vadd.f32 %v767_v59, %v759_v58 }
 0x2d8   :  { %1713 = vtanh.f32 %v769_v60 }
 0x2e2   :  { %v1714_v61 = vpop.eup %1713 }
 0x2e3   :  { %772 = vrot.lane.b32.xlu1 %v1714_v61, %s1798_s30 }
 0x355   :  { %v773_v62 = vpop.permute.xlu1 %772 }
 0x356   :  { %v775_v63 = vmul.f32 %v1712_v55, %v773_v62 }
 0x358   :  { %v777_v0 = vpack.c.bf16 %v775_v63, %v775_v63 }
 0x35a   :  { %779 = vrot.lane.b32.xlu1 %v777_v0, %s1799_s6 }
 0x3cc   :  { %v780_v1 = vpop.permute.xlu1 %779 }
 0x3cd   :  { %1606 = vmatmul.mubr.msk.bf16.vlgmr.msra.gmra.mrb[16].mxu1 %vm707_vm3, %v780_v1 }
 0x3ce   :  { %1610 = vmatpush3.bf16.msra.mxu1 %v2058_v20  ;;  %1613 = vmatprep.mubr.msk.bf16.mxu1 %vm1797_vm2, %v1795_v5 }
 0x3cf   :  { %1611 = vmatprep.subr.bf16.mxu1 %v1795_v5 }
 0x3d2   :  { %1612 = vmatpush3.bf16.msra.mxu1 %v2068_v21 }
 0x3d3   :  { %1625 = vmatprep.subr.bf16.mxu1 %v1795_v5 }
 0x4a0   :  { %v818_v2 = vpop.f32.mrb[16].mxu1 }
 0x4a1   :  { %v824_v3 = vadd.f32 %v818_v2, %v776_v27  ;;  %v1607_v4 = vpop.f32.mrb[17].mxu1 }
 0x4a2   :  { %v821_v6 = vpop.f32.mrb[18].mxu1 }
 0x4a3   :  { %1715 = vtanh.f32 %v824_v3  ;;  %v1608_v7 = vpop.f32.mrb[19].mxu1  ;;  %v1531_v9 = vmul.f32 -1.442695, %v824_v3 }
 0x4a5   :  { %1717 = vpow2.f32 %v1531_v9 }
 0x4ad   :  { %v1716_v8 = vpop.eup %1715 }
 0x4ae   :  { %834 = vrot.lane.b32.xlu0 %v1716_v8, %s1798_s30 }
 0x4af   :  { %v1718_v10 = vpop.eup %1717 }
 0x4b0   :  { %v828_v11 = vadd.f32 1.0, %v1718_v10 }
 0x4b2   :  { %1719 = vrcp.f32 %v828_v11 }
 0x4bc   :  { %v1720_v12 = vpop.eup %1719 }
 0x4bd   :  { %v832_v15 = vmul.f32 %v1720_v12, %v769_v60 }
 0x520   :  { %v835_v13 = vpop.permute.xlu0 %834 }
 0x521   :  { %v837_v14 = vmul.f32 %v1720_v12, %v835_v13 }
 0x523   :  { %839 = vrot.lane.b32.xlu1 %v837_v14, %s1799_s6 }
 0x595   :  { %v840_v16 = vpop.permute.xlu1 %839 }
 0x596   :  { %v842_v17 = vadd.f32 %v840_v16, %v832_v15 }
 0x598   :  { %1721 = vtanh.f32 %v842_v17 }
 0x5a2   :  { %v1722_v18 = vpop.eup %1721 }
 0x5a3   :  { %845 = vrot.lane.b32.xlu0 %v1722_v18, %s1798_s30 }
 0x615   :  { %v846_v22 = vpop.permute.xlu0 %845 }
 0x616   :  { %v848_v23 = vmul.f32 %v1720_v12, %v846_v22 }
 0x618   :  { %v850_v24 = vpack.c.bf16 %v848_v23, %v848_v23 }
 0x61a   :  { %852 = vrot.lane.b32.xlu1 %v850_v24, %s1799_s6 }
 0x68c   :  { %v853_v19 = vpop.permute.xlu1 %852 }
 0x68d   :  { %1614 = vmatmul.mubr.msk.bf16.vlgmr.msra.gmra.mrb[20].mxu1 %vm707_vm3, %v853_v19 }
 0x68e   :  { %1626 = vmatpush3.bf16.msra.mxu1 %v2058_v20  ;;  %1629 = vmatprep.mubr.msk.bf16.mxu1 %vm1797_vm2, %v1795_v5 }
 0x68f   :  { %1627 = vmatprep.subr.bf16.mxu1 %v1795_v5 }
 0x692   :  { %1628 = vmatpush3.bf16.msra.mxu1 %v2068_v21 }
 0x693   :  { %1641 = vmatprep.subr.bf16.mxu1 %v1795_v5 }
 0x760   :  { %v891_v26 = vpop.f32.mrb[20].mxu1 }
 0x761   :  { %v897_v27 = vadd.f32 %v891_v26, %v2091_v25  ;;  %v1615_v29 = vpop.f32.mrb[21].mxu1 }
 0x762   :  { %v894_v30 = vpop.f32.mrb[22].mxu1 }
 0x763   :  { %1723 = vtanh.f32 %v897_v27  ;;  %v1616_v31 = vpop.f32.mrb[23].mxu1  ;;  %v1533_v33 = vmul.f32 -1.442695, %v897_v27 }
 0x765   :  { %1725 = vpow2.f32 %v1533_v33 }
 0x76d   :  { %v1724_v32 = vpop.eup %1723 }
 0x76e   :  { %907 = vrot.lane.b32.xlu0 %v1724_v32, %s1798_s30 }
 0x76f   :  { %v1726_v34 = vpop.eup %1725 }
 0x770   :  { %v901_v37 = vadd.f32 1.0, %v1726_v34 }
 0x772   :  { %1727 = vrcp.f32 %v901_v37 }
 0x77c   :  { %v1728_v38 = vpop.eup %1727 }
 0x77d   :  { %v905_v43 = vmul.f32 %v1728_v38, %v842_v17 }
 0x7e0   :  { %v908_v41 = vpop.permute.xlu0 %907 }
 0x7e1   :  { %v910_v42 = vmul.f32 %v1728_v38, %v908_v41 }
 0x7e3   :  { %912 = vrot.lane.b32.xlu1 %v910_v42, %s1799_s6 }
 0x855   :  { %v913_v44 = vpop.permute.xlu1 %912 }
 0x856   :  { %v915_v25 = vadd.f32 %v913_v44, %v905_v43 }
 0x858   :  { %1729 = vtanh.f32 %v915_v25 }
 0x862   :  { %v1730_v45 = vpop.eup %1729 }
 0x863   :  { %918 = vrot.lane.b32.xlu0 %v1730_v45, %s1798_s30 }
 0x8d5   :  { %v919_v46 = vpop.permute.xlu0 %918 }
 0x8d6   :  { %v921_v47 = vmul.f32 %v1728_v38, %v919_v46 }
 0x8d8   :  { %v923_v48 = vpack.c.bf16 %v921_v47, %v921_v47 }
 0x8da   :  { %925 = vrot.lane.b32.xlu1 %v923_v48, %s1799_s6 }
 0x94c   :  { %v926_v49 = vpop.permute.xlu1 %925 }
 0x94d   :  { %1622 = vmatmul.mubr.msk.bf16.vlgmr.msra.gmra.mrb[8].mxu0 %vm707_vm3, %v926_v49 }
 0x94e   :  { %1634 = vmatpush3.bf16.msra.mxu0 %v2058_v20  ;;  %1637 = vmatprep.mubr.msk.bf16.mxu0 %vm1797_vm2, %v1795_v5 }
 0x94f   :  { %1635 = vmatprep.subr.bf16.mxu0 %v1795_v5 }
 0x952   :  { %1636 = vmatpush3.bf16.msra.mxu0 %v2068_v21 }
 0x953   :  { %1649 = vmatprep.subr.bf16.mxu0 %v1795_v5 }
 0xa20   :  { %v964_v50 = vpop.f32.mrb[8].mxu0 }
 0xa21   :  { %v970_v51 = vadd.f32 %v964_v50, %v2093_v28  ;;  %v1623_v52 = vpop.f32.mrb[9].mxu0 }
 0xa22   :  { %v967_v53 = vpop.f32.mrb[10].mxu0 }
 0xa23   :  { %1731 = vtanh.f32 %v970_v51  ;;  %v1624_v54 = vpop.f32.mrb[11].mxu0  ;;  %v1535_v56 = vmul.f32 -1.442695, %v970_v51 }
 0xa25   :  { %1733 = vpow2.f32 %v1535_v56 }
 0xa2d   :  { %v1732_v55 = vpop.eup %1731 }
 0xa2e   :  { %980 = vrot.lane.b32.xlu0 %v1732_v55, %s1798_s30 }
 0xa2f   :  { %v1734_v57 = vpop.eup %1733 }
 0xa30   :  { %v974_v58 = vadd.f32 1.0, %v1734_v57 }
 0xa32   :  { %1735 = vrcp.f32 %v974_v58 }
 0xa3c   :  { %v1736_v59 = vpop.eup %1735 }
 0xa3d   :  { %v978_v62 = vmul.f32 %v1736_v59, %v915_v25 }
 0xaa0   :  { %v981_v60 = vpop.permute.xlu0 %980 }
 0xaa1   :  { %v983_v61 = vmul.f32 %v1736_v59, %v981_v60 }
 0xaa3   :  { %985 = vrot.lane.b32.xlu1 %v983_v61, %s1799_s6 }
 0xb15   :  { %v986_v63 = vpop.permute.xlu1 %985 }
 0xb16   :  { %v988_v28 = vadd.f32 %v986_v63, %v978_v62 }
 0xb18   :  { %1737 = vtanh.f32 %v988_v28 }
 0xb22   :  { %v1738_v0 = vpop.eup %1737 }
 0xb23   :  { %991 = vrot.lane.b32.xlu0 %v1738_v0, %s1798_s30 }
 0xb95   :  { %v992_v1 = vpop.permute.xlu0 %991 }
 0xb96   :  { %v994_v2 = vmul.f32 %v1736_v59, %v992_v1 }
 0xb98   :  { %v996_v3 = vpack.c.bf16 %v994_v2, %v994_v2 }
 0xb9a   :  { %998 = vrot.lane.b32.xlu1 %v996_v3, %s1799_s6 }
 0xc0c   :  { %v999_v4 = vpop.permute.xlu1 %998 }
 0xc0d   :  { %1630 = vmatmul.mubr.msk.bf16.vlgmr.msra.gmra.mrb[24].mxu1 %vm707_vm3, %v999_v4 }
 0xc0e   :  { %1642 = vmatpush3.bf16.msra.mxu1 %v2058_v20  ;;  %1645 = vmatprep.mubr.msk.bf16.mxu1 %vm1797_vm2, %v1795_v5 }
 0xc0f   :  { %1643 = vmatprep.subr.bf16.mxu1 %v1795_v5 }
 0xc12   :  { %1644 = vmatpush3.bf16.msra.mxu1 %v2068_v21 }
 0xc13   :  { %1657 = vmatprep.subr.bf16.mxu1 %v1795_v5 }
 0xce0   :  { %v1037_v6 = vpop.f32.mrb[24].mxu1 }
 0xce1   :  { %v1043_v7 = vadd.f32 %v1037_v6, %v2095_v35  ;;  %v1631_v8 = vpop.f32.mrb[25].mxu1 }
 0xce2   :  { %v1040_v9 = vpop.f32.mrb[26].mxu1 }
 0xce3   :  { %1739 = vtanh.f32 %v1043_v7  ;;  %v1632_v10 = vpop.f32.mrb[27].mxu1  ;;  %v1537_v12 = vmul.f32 -1.442695, %v1043_v7 }
 0xce5   :  { %1741 = vpow2.f32 %v1537_v12 }
 0xced   :  { %v1740_v11 = vpop.eup %1739 }
 0xcee   :  { %1053 = vrot.lane.b32.xlu0 %v1740_v11, %s1798_s30 }
 0xcef   :  { %v1742_v13 = vpop.eup %1741 }
 0xcf0   :  { %v1047_v14 = vadd.f32 1.0, %v1742_v13 }
 0xcf2   :  { %1743 = vrcp.f32 %v1047_v14 }
 0xcfc   :  { %v1744_v15 = vpop.eup %1743 }
 0xcfd   :  { %v1051_v18 = vmul.f32 %v1744_v15, %v988_v28 }
 0xd60   :  { %v1054_v16 = vpop.permute.xlu0 %1053 }
 0xd61   :  { %v1056_v17 = vmul.f32 %v1744_v15, %v1054_v16 }
 0xd63   :  { %1058 = vrot.lane.b32.xlu1 %v1056_v17, %s1799_s6 }
 0xdd5   :  { %v1059_v22 = vpop.permute.xlu1 %1058 }
 0xdd6   :  { %v1061_v35 = vadd.f32 %v1059_v22, %v1051_v18  ;;  %v1697_v18 = vld [vmem:[%s2242_s3 + $0x10] sm:$0xff]   ;;  %v1698_v22 = vld [vmem:[%s2242_s3 + $0x18] sm:$0xff]  }
 0xdd8   :  { %1745 = vtanh.f32 %v1061_v35 }
 0xde2   :  { %v1746_v23 = vpop.eup %1745 }
 0xde3   :  { %1064 = vrot.lane.b32.xlu0 %v1746_v23, %s1798_s30  ;;  %v1699_v23 = vld [vmem:[%s2242_s3 + $0x20] sm:$0xff]  }
 0xe55   :  { %v1065_v24 = vpop.permute.xlu0 %1064 }
 0xe56   :  { %v1067_v19 = vmul.f32 %v1744_v15, %v1065_v24  ;;  %v1700_v24 = vld [vmem:[%s2242_s3 + $0x28] sm:$0xff]  }
 0xe58   :  { %v1069_v26 = vpack.c.bf16 %v1067_v19, %v1067_v19  ;;  %v1701_v19 = vld [vmem:[%s2242_s3 + $0x30] sm:$0xff]  }
 0xe5a   :  { %1071 = vrot.lane.b32.xlu1 %v1069_v26, %s1799_s6 }
 0xecc   :  { %v1072_v27 = vpop.permute.xlu1 %1071 }
 0xecd   :  { %1638 = vmatmul.mubr.msk.bf16.vlgmr.msra.gmra.mrb[12].mxu0 %vm707_vm3, %v1072_v27 }
 0xece   :  { %1650 = vmatpush3.bf16.msra.mxu0 %v2058_v20  ;;  %1653 = vmatprep.mubr.msk.bf16.mxu0 %vm1797_vm2, %v1795_v5 }
 0xecf   :  { %1651 = vmatprep.subr.bf16.mxu0 %v1795_v5 }
 0xed2   :  { %1652 = vmatpush3.bf16.msra.mxu0 %v2068_v21 }
 0xed3   :  { %1665 = vmatprep.subr.bf16.mxu0 %v1795_v5 }
 0xfa0   :  { %v1110_v29 = vpop.f32.mrb[12].mxu0 }
 0xfa1   :  { %v1116_v30 = vadd.f32 %v1110_v29, %v2099_v39  ;;  %v1639_v31 = vpop.f32.mrb[13].mxu0  ;;  %v1702_v29 = vld [vmem:[%s2242_s3 + $0x38] sm:$0xff]  }
 0xfa2   :  { %v1113_v32 = vpop.f32.mrb[14].mxu0  ;;  %v1703_v31 = vld [vmem:[%s2242_s3 + $0x40] sm:$0xff]  }
 0xfa3   :  { %1747 = vtanh.f32 %v1116_v30  ;;  %v1640_v33 = vpop.f32.mrb[15].mxu0  ;;  %v1539_v20 = vmul.f32 -1.442695, %v1116_v30  ;;  %v1704_v32 = vld [vmem:[%s2242_s3 + $0x48] sm:$0xff]  }
 0xfa5   :  { %1749 = vpow2.f32 %v1539_v20  ;;  %v1706_v20 = vld [vmem:[%s2242_s3 + $0x58] sm:$0xff]  }
 0xfad   :  { %v1748_v34 = vpop.eup %1747 }
 0xfae   :  { %1126 = vrot.lane.b32.xlu0 %v1748_v34, %s1798_s30  ;;  %v1705_v34 = vld [vmem:[%s2242_s3 + $0x50] sm:$0xff]   ;;  %s1771_s3 = scalar_lea.vmem %s1452_s0, 32 }
 0xfaf   :  { %v1750_v37 = vpop.eup %1749  ;;  %p1772_p0 = scmp.ne.s32.totalorder %s1452_s0, %s1771_s3  ;;  %p1777_p2 = scmp.lt.s32.totalorder %s1771_s3, %s1771_s3 }
 0xfb0   :  { %v1120_v38 = vadd.f32 1.0, %v1750_v37  ;;  %v1544_v37 = vld [vmem:[%s2243_s4 + $0x1] ss:$0 sm:$0xff] }
 0xfb1   :  { %p1778_p3 = por %p1777_p2, %p1776_p1 }
 0xfb2   :  { %1751 = vrcp.f32 %v1120_v38 }
 0xfb3   :  { %p1779_p4 = pnand %p1778_p3, %p1772_p0 }
 0xfbc   :  { %v1752_v41 = vpop.eup %1751 }
 0xfbd   :  { %v1124_v43 = vmul.f32 %v1752_v41, %v1061_v35 }
0x1020   :  { %v1127_v42 = vpop.permute.xlu0 %1126 }
0x1021   :  { %v1129_v21 = vmul.f32 %v1752_v41, %v1127_v42 }
0x1023   :  { %1131 = vrot.lane.b32.xlu1 %v1129_v21, %s1799_s6 }
0x1095   :  { %v1132_v44 = vpop.permute.xlu1 %1131 }
0x1096   :  { %v1134_v39 = vadd.f32 %v1132_v44, %v1124_v43 }
0x1098   :  { %1753 = vtanh.f32 %v1134_v39 }
0x10a2   :  { %v1754_v25 = vpop.eup %1753 }
0x10a3   :  { %1137 = vrot.lane.b32.xlu0 %v1754_v25, %s1798_s30 }
0x1115   :  { %v1138_v45 = vpop.permute.xlu0 %1137 }
0x1116   :  { %v1140_v46 = vmul.f32 %v1752_v41, %v1138_v45 }
0x1118   :  { %v1142_v47 = vpack.c.bf16 %v1140_v46, %v1140_v46 }
0x111a   :  { %1144 = vrot.lane.b32.xlu1 %v1142_v47, %s1799_s6 }
0x118c   :  { %v1145_v48 = vpop.permute.xlu1 %1144 }
0x118d   :  { %1646 = vmatmul.mubr.msk.bf16.vlgmr.msra.gmra.mrb[28].mxu1 %vm707_vm3, %v1145_v48 }
0x118e   :  { %1661 = vmatprep.mubr.msk.bf16.mxu1 %vm1797_vm2, %v1795_v5  ;;  %1658 = vmatpush3.bf16.msra.mxu1 %v1697_v18 }
0x118f   :  { %1659 = vmatprep.subr.bf16.mxu1 %v1795_v5 }
0x1192   :  { %1660 = vmatpush3.bf16.msra.mxu1 %v1698_v22 }
0x1260   :  { %v1183_v49 = vpop.f32.mrb[28].mxu1 }
0x1261   :  { %v1189_v50 = vadd.f32 %v1183_v49, %v2097_v36  ;;  %v1647_v51 = vpop.f32.mrb[29].mxu1 }
0x1262   :  { %v1186_v52 = vpop.f32.mrb[30].mxu1 }
0x1263   :  { %1755 = vtanh.f32 %v1189_v50  ;;  %v1648_v53 = vpop.f32.mrb[31].mxu1  ;;  %v1541_v55 = vmul.f32 -1.442695, %v1189_v50 }
0x1265   :  { %1757 = vpow2.f32 %v1541_v55 }
0x126d   :  { %v1756_v54 = vpop.eup %1755 }
0x126e   :  { %1199 = vrot.lane.b32.xlu0 %v1756_v54, %s1798_s30 }
0x126f   :  { %v1758_v56 = vpop.eup %1757 }
0x1270   :  { %v1193_v57 = vadd.f32 1.0, %v1758_v56 }
0x1272   :  { %1759 = vrcp.f32 %v1193_v57 }
0x127c   :  { %v1760_v58 = vpop.eup %1759 }
0x127d   :  { %v1197_v61 = vmul.f32 %v1760_v58, %v1134_v39 }
0x12e0   :  { %v1200_v59 = vpop.permute.xlu0 %1199 }
0x12e1   :  { %v1202_v60 = vmul.f32 %v1760_v58, %v1200_v59 }
0x12e3   :  { %1204 = vrot.lane.b32.xlu1 %v1202_v60, %s1799_s6 }
0x1355   :  { %v1205_v62 = vpop.permute.xlu1 %1204 }
0x1356   :  { %v1207_v36 = vadd.f32 %v1205_v62, %v1197_v61 }
0x1358   :  { %1761 = vtanh.f32 %v1207_v36 }
0x1362   :  { %v1762_v63 = vpop.eup %1761 }
0x1363   :  { %1210 = vrot.lane.b32.xlu0 %v1762_v63, %s1798_s30 }
0x13d5   :  { %v1211_v28 = vpop.permute.xlu0 %1210 }
0x13d6   :  { %v1213_v0 = vmul.f32 %v1760_v58, %v1211_v28 }
0x13d8   :  { %v1215_v1 = vpack.c.bf16 %v1213_v0, %v1213_v0 }
0x13da   :  { %1217 = vrot.lane.b32.xlu1 %v1215_v1, %s1799_s6 }
0x144c   :  { %v1218_v2 = vpop.permute.xlu1 %1217 }
0x144d   :  { %1654 = vmatmul.mubr.msk.bf16.vlgmr.msra.gmra.mrb[16].mxu0 %vm707_vm3, %v1218_v2 }
0x144e   :  { %1681 = vmatprep.mubr.msk.bf16.mxu0 %vm1797_vm2, %v1795_v5  ;;  %1666 = vmatpush3.bf16.msra.mxu0 %v1699_v23 }
0x144f   :  { %1667 = vmatprep.subr.bf16.mxu0 %v1795_v5 }
0x1452   :  { %1668 = vmatpush3.bf16.msra.mxu0 %v1700_v24 }
0x1453   :  { %1669 = vmatprep.subr.bf16.mxu0 %v1795_v5 }
0x1456   :  { %1670 = vmatpush3.bf16.msra.mxu0 %v1701_v19 }
0x1457   :  { %1671 = vmatprep.subr.bf16.mxu0 %v1795_v5 }
0x145a   :  { %1672 = vmatpush3.bf16.msra.mxu0 %v1702_v29 }
0x145b   :  { %1673 = vmatprep.subr.bf16.mxu0 %v1795_v5 }
0x145e   :  { %1674 = vmatpush3.bf16.msra.mxu0 %v1703_v31 }
0x145f   :  { %1675 = vmatprep.subr.bf16.mxu0 %v1795_v5 }
0x1462   :  { %1676 = vmatpush3.bf16.msra.mxu0 %v1704_v32 }
0x1463   :  { %1677 = vmatprep.subr.bf16.mxu0 %v1795_v5 }
0x1466   :  { %1678 = vmatpush3.bf16.msra.mxu0 %v1705_v34 }
0x1467   :  { %1679 = vmatprep.subr.bf16.mxu0 %v1795_v5  ;;  %v1548_v5 = vld [vmem:[%s2243_s4 + $0x2] ss:$0 sm:$0xff] }
0x146a   :  { %1680 = vmatpush3.bf16.msra.mxu0 %v1706_v20 }
0x1520   :  { %v1256_v3 = vpop.f32.mrb[16].mxu0 }
0x1521   :  { %v1262_v4 = vadd.f32 %v1256_v3, %v2101_v40  ;;  %v1655_v6 = vpop.f32.mrb[17].mxu0 }
0x1522   :  { %v1259_v7 = vpop.f32.mrb[18].mxu0 }
0x1523   :  { %1763 = vtanh.f32 %v1262_v4  ;;  %v1656_v8 = vpop.f32.mrb[19].mxu0  ;;  %v1543_v10 = vmul.f32 -1.442695, %v1262_v4 }
0x1525   :  { %1765 = vpow2.f32 %v1543_v10 }
0x152d   :  { %v1764_v9 = vpop.eup %1763 }
0x152e   :  { %1272 = vrot.lane.b32.xlu0 %v1764_v9, %s1798_s30 }
0x152f   :  { %v1766_v11 = vpop.eup %1765 }
0x1530   :  { %v1266_v12 = vadd.f32 1.0, %v1766_v11 }
0x1532   :  { %1767 = vrcp.f32 %v1266_v12 }
0x153c   :  { %v1768_v13 = vpop.eup %1767 }
0x153d   :  { %v1270_v16 = vmul.f32 %v1768_v13, %v1207_v36 }
0x15a0   :  { %v1273_v14 = vpop.permute.xlu0 %1272 }
0x15a1   :  { %v1275_v15 = vmul.f32 %v1768_v13, %v1273_v14 }
0x15a3   :  { %1277 = vrot.lane.b32.xlu1 %v1275_v15, %s1799_s6 }
0x1615   :  { %v1278_v17 = vpop.permute.xlu1 %1277 }
0x1616   :  { %v1280_v40 = vadd.f32 %v1278_v17, %v1270_v16 }
0x1618   :  { %1769 = vtanh.f32 %v1280_v40 }
0x1622   :  { %v1770_v35 = vpop.eup %1769 }
0x1623   :  { %1283 = vrot.lane.b32.xlu0 %v1770_v35, %s1798_s30 }
0x1695   :  { %v1284_v26 = vpop.permute.xlu0 %1283 }
0x1696   :  { %v1286_v27 = vmul.f32 %v1768_v13, %v1284_v26 }
0x1698   :  { %v1287_v30 = vpack.c.bf16 %v1286_v27, %v1286_v27 }
0x169a   :  { %1293 = vrot.lane.b32.xlu1 %v1287_v30, %s1799_s6 }
0x170c   :  { %v1294_v33 = vpop.permute.xlu1 %1293 }
0x170d   :  { %1662 = vmatmul.mubr.msk.bf16.vlgmr.msra.gmra.mrb[32].mxu1 %vm707_vm3, %v1294_v33 }
0x17e0   :  { %v1344_v38 = vpop.f32.mrb[32].mxu1 }
0x17e1   :  { %v1345_v41 = vadd.f32 %v1544_v37, %v1344_v38  ;;  %v1663_v42 = vpop.f32.mrb[33].mxu1 }
0x17e2   :  { %v1347_v21 = vpop.f32.mrb[34].mxu1 }
0x17e3   :  { %v1350_v43 = vmax.f32 %v1345_v41, 0.0  ;;  %v1664_v44 = vpop.f32.mrb[35].mxu1 }
0x17e5   :  { %v1351_v39 = vpack.c.bf16 %v1350_v43, %v1350_v43 }
0x17e7   :  { %1682 = vmatmul.mubr.bf16.vlgmr.msra.gmra.mrb[20].mxu0 %v1351_v39 }
0x18ba   :  { %v1438_v25 = vpop.f32.mrb[20].mxu0 }
0x18bb   :  { %v1439_v45 = vadd.f32 %v1548_v5, %v1438_v25  ;;  %v1683_v46 = vpop.f32.mrb[21].mxu0 }
0x18bc   :  { %v1441_v47 = vpop.f32.mrb[22].mxu0 }
0x18bd   :  { %1444 = vst [vmem:[#allocation2] sm:$0x3] %v1439_v45  ;;  %v1684_v48 = vpop.f32.mrb[23].mxu0 }
0x18be   :  { %1782 = shalt.err (!%p1779_p4)
}
0x18bf   :  { %s1783_s4 = scalar_lea.hbm %s2244_s5, 32 }
0x18c0   :  { %p1784_p5 = scmp.ne.s32.totalorder %s2244_s5, %s1783_s4  ;;  %p1787_p6 = scmp.lt.u32.totalorder %s1783_s4, %s2244_s5 }
0x18c2   :  { %p1789_p7 = pnand %p1787_p6, %p1784_p5 }
0x18c4   :  { %1792 = shalt.err (!%p1789_p7)
}
0x18c5   :  { %1454 = dma.vmem_to_hbm [thread:$0]  %s1452_s0, 32, %s2244_s5, [#allocation3]  }
0x18c6   :  { %1793 = dma.done.wait [#allocation3], 32  }
0x18c7   :  { %1794 = vsyncadd [#allocation3], 4294967264 }
0x18c8   :  { %1458 = vsyncpa [#allocation3], 1 }

</bundles_post_ra>
